<compile_context>
chip_gen: v6e
topology: v6e:2x2x1
jax: 0.10.0
libtpu: 0.0.40
codegen_flags: <defaults>
</compile_context>

<pallas_src>
import jax
import jax.numpy as jnp
from jax.experimental import pallas as pl
from jax.experimental.pallas import tpu as pltpu


# ---------------------------------------------------------------------------
# Model hyper-parameters (seq length must be 16 so fc1's 128*6 input works).
# ---------------------------------------------------------------------------
EMBED_DIM = 32          # embedding_dim (small for the demo)
SEQ_LEN = 16
NUM_GROUPS = 4
C1_OUT, C1_K = 64, 2
C2_OUT, C2_K = 128, 3
L1 = SEQ_LEN - (C1_K - 1)          # 15  (conv1 output length)
L2 = L1 - (C2_K - 1)               # 13  (conv2 output length)
POOL_LEN = L2 // 2                 # 6
FC1_IN = C2_OUT * POOL_LEN         # 768
FC1_OUT = 128
FC2_OUT = NUM_GROUPS * 16          # 64
FC2_PAD = 128                      # lane-dense padded logits width


def _round_up(n, m):
    return ((n + m - 1) // m) * m


# ---------------------------------------------------------------------------
# Pallas kernel: whole forward pass for a TB-sample tile per grid step.
# ---------------------------------------------------------------------------
def connections_kernel(x_ref, w1_ref, b1_ref, w2_ref, b2_ref,
                       wf1_ref, bf1_ref, wf2_ref, bf2_ref, o_ref):
    TB = x_ref.shape[1]

    # conv1: 2 per-tap K=32 matmuls accumulated in f32.  Tap shift is a free
    # leading-dim slice; M = L1*TB keeps the MXU pipeline full.
    x = x_ref[...]                                                  # (16, TB, 32) bf16
    acc1 = jnp.dot(x[0:L1].reshape(L1 * TB, EMBED_DIM), w1_ref[0],
                   preferred_element_type=jnp.float32)
    for k in range(1, C1_K):
        acc1 += jnp.dot(x[k:k + L1].reshape(L1 * TB, EMBED_DIM), w1_ref[k],
                        preferred_element_type=jnp.float32)
    h1 = jnp.maximum(acc1 + b1_ref[...], 0.0)
    h1 = h1.reshape(L1, TB, C1_OUT).astype(jnp.bfloat16)            # (15, TB, 64)

    # conv2: in-kernel im2col (lane-concat of the 3 tap slabs) -> single
    # fused K=192 matmul, M = L2*TB.  Fills the 256-deep MXU (v6e/v7x) far
    # better than three K=64 per-tap matmuls (1 push per MxN tile vs 3).
    h1c = jnp.concatenate([h1[k:k + L2] for k in range(C2_K)], axis=-1)
    acc2 = jnp.dot(h1c.reshape(L2 * TB, C2_K * C1_OUT), w2_ref[...],
                   preferred_element_type=jnp.float32)
    h2 = jnp.maximum(acc2 + b2_ref[...], 0.0).reshape(L2, TB, C2_OUT)

    # MaxPool1d(2) + fc1 tap pairing: pool slab t = elementwise max of time
    # slabs (2t, 2t+1); fc1 pair tp lane-concats pool slabs (2tp, 2tp+1) into
    # a (TB, 256) operand -> 3 accumulated K=256 matmuls (per-tap weights).
    h3 = bf1_ref[...]                                               # bias folded in
    for tp in range(POOL_LEN // 2):
        pa = jnp.maximum(h2[4 * tp + 0], h2[4 * tp + 1])            # (TB, 128)
        pb = jnp.maximum(h2[4 * tp + 2], h2[4 * tp + 3])            # (TB, 128)
        pq = jnp.concatenate([pa, pb], axis=-1).astype(jnp.bfloat16)  # (TB, 256)
        h3 = h3 + jnp.dot(pq, wf1_ref[tp], preferred_element_type=jnp.float32)
    h3 = jnp.maximum(h3, 0.0).astype(jnp.bfloat16)                  # (TB, 128)

    # fc2: weights zero-padded to 128 output lanes -> lane-dense bf16 store.
    # NOTE: padded lanes 64..127 hold sigmoid(0)=0.5; the wrapper slices :64.
    logits = jnp.dot(h3, wf2_ref[...], preferred_element_type=jnp.float32)
    o_ref[...] = jax.nn.sigmoid(logits + bf2_ref[...]).astype(o_ref.dtype)


def connections_cnn_pallas(x, params, tile_b=512):
    """x: (B, SEQ_LEN, EMBED_DIM) float32 -> (B, 16, NUM_GROUPS) float32."""
    B = x.shape[0]
    (w1, b1, w2, b2, wf1, bf1, wf2, bf2) = params

    # ---- glue: PyTorch-layout weights -> kernel-friendly bf16 layouts ----
    # conv1 weights as (K, Cin, Cout) for per-tap matmuls.
    w1k = jnp.transpose(w1, (2, 1, 0)).astype(jnp.bfloat16)          # (2, 32, 64)
    # conv2 im2col weights: row index = k*C1_OUT + cin (matches lane concat).
    w2k = jnp.transpose(w2, (2, 1, 0)).reshape(
        C2_K * C1_OUT, C2_OUT).astype(jnp.bfloat16)                  # (192, 128)
    # fc1: PyTorch flatten index = c*POOL_LEN + t; pair time steps (2tp,2tp+1)
    # along K -> (3, 256, 128) with K index = j*128 + c.
    wf1k = (wf1.reshape(FC1_OUT, C2_OUT, POOL_LEN)                   # (out, c, t)
               .transpose(2, 1, 0)                                   # (t, c, out)
               .reshape(POOL_LEN // 2, 2 * C2_OUT, FC1_OUT)
               .astype(jnp.bfloat16))                                # (3, 256, 128)
    # fc2: transpose and zero-pad columns 64..127 for a lane-dense output.
    wf2k = (jnp.zeros((FC1_OUT, FC2_PAD), jnp.float32)
               .at[:, :FC2_OUT].set(wf2.T)).astype(jnp.bfloat16)
    b1k = b1.reshape(1, C1_OUT).astype(jnp.float32)
    b2k = b2.reshape(1, C2_OUT).astype(jnp.float32)
    bf1k = bf1.reshape(1, FC1_OUT).astype(jnp.float32)
    bf2k = jnp.zeros((1, FC2_PAD), jnp.float32).at[:, :FC2_OUT].set(bf2)

    # ---- batch tiling: TB samples per grid step (TB multiple of 16) ----
    TB = _round_up(min(tile_b, _round_up(B, 16)), 16)
    # Keep the (parallel) grid at least 2 wide when the batch allows it so
    # both v7x TensorCores get work; grid=(1,) would idle an entire core.
    while TB > 16 and _round_up(B, TB) // TB < 2 and B > TB // 2:
        TB = _round_up(TB // 2, 16)
    B_pad = _round_up(B, TB)
    xp = jnp.pad(x, ((0, B_pad - B), (0, 0), (0, 0))) if B_pad != B else x

    # Time-major, batch-on-sublanes layout; no wrapper-side im2col.
    xk = jnp.transpose(xp, (1, 0, 2)).astype(jnp.bfloat16)           # (16, B_pad, 32)

    # Constant index_maps -> weights/biases stay resident across grid steps.
    def resident(a):
        return pl.BlockSpec(a.shape, lambda i, _nd=a.ndim: (0,) * _nd)

    flops = 2 * B_pad * (L1 * C1_K * EMBED_DIM * C1_OUT
                         + L2 * C2_K * C1_OUT * C2_OUT
                         + POOL_LEN * C2_OUT * FC1_OUT
                         + FC1_OUT * FC2_PAD)
    bytes_accessed = (xk.size * 2 + B_pad * FC2_PAD * 2
                      + (w1k.size + w2k.size + wf1k.size + wf2k.size) * 2
                      + (b1k.size + b2k.size + bf1k.size + bf2k.size) * 4)

    # TB=512 live intermediates (f32 acc1/acc2 + bf16 im2col + 2x input
    # buffers) are ~14 MiB -> budget 32 MiB explicitly (above v5e's 16 MiB
    # default scoped limit, well under v7x's 64 MiB physical). TB=1024 sweeps
    # need ~48 MiB (v5e/v6e only).
    vmem_limit = (32 if TB <= 512 else 48) * 1024 * 1024

    out = pl.pallas_call(
        connections_kernel,
        out_shape=jax.ShapeDtypeStruct((B_pad, FC2_PAD), jnp.bfloat16),
        grid_spec=pltpu.PrefetchScalarGridSpec(
            num_scalar_prefetch=0,
            grid=(B_pad // TB,),
            in_specs=[
                pl.BlockSpec((SEQ_LEN, TB, EMBED_DIM), lambda i: (0, i, 0)),
                resident(w1k), resident(b1k),
                resident(w2k), resident(b2k),
                resident(wf1k), resident(bf1k),
                resident(wf2k), resident(bf2k),
            ],
            out_specs=pl.BlockSpec((TB, FC2_PAD), lambda i: (i, 0)),
        ),
        compiler_params=pltpu.CompilerParams(
            dimension_semantics=("parallel",),
            vmem_limit_bytes=vmem_limit),
        cost_estimate=pl.CostEstimate(
            flops=flops,
            transcendentals=B_pad * FC2_PAD,
            bytes_accessed=bytes_accessed),
    )(xk, w1k, b1k, w2k, b2k, wf1k, bf1k, wf2k, bf2k)

    return out[:B, :FC2_OUT].astype(jnp.float32).reshape(-1, 16, NUM_GROUPS)


# ---------------------------------------------------------------------------
# Pure-JAX reference mirroring the PyTorch forward exactly (f32, for checks).
# ---------------------------------------------------------------------------
def connections_cnn_ref(x, params):
    (w1, b1, w2, b2, wf1, bf1, wf2, bf2) = params
    xt = jnp.transpose(x, (0, 2, 1))                   # (B, E, L)   NCW
    y1 = jax.lax.conv_general_dilated(
        xt, w1, window_strides=(1,), padding="VALID",
        dimension_numbers=("NCH", "OIH", "NCH"))
    y1 = jax.nn.relu(y1 + b1[None, :, None])           # (B, 64, 15)
    y2 = jax.lax.conv_general_dilated(
        y1, w2, window_strides=(1,), padding="VALID",
        dimension_numbers=("NCH", "OIH", "NCH"))
    y2 = jax.nn.relu(y2 + b2[None, :, None])           # (B, 128, 13)
    Bn, C, Lp = y2.shape
    y2 = y2[:, :, : (Lp // 2) * 2].reshape(Bn, C, Lp // 2, 2).max(axis=-1)
    flat = y2.reshape(Bn, -1)                          # (B, 768) channel-major
    h = jax.nn.relu(flat @ wf1.T + bf1)
    out = jax.nn.sigmoid(h @ wf2.T + bf2)
    return out.reshape(-1, 16, NUM_GROUPS)


# ---------------------------------------------------------------------------
# Deterministic parameter init (PyTorch layouts) + driver.
# ---------------------------------------------------------------------------
def init_params(key):
    ks = jax.random.split(key, 8)
    u = lambda k, shape, bound: jax.random.uniform(
        k, shape, jnp.float32, minval=-bound, maxval=bound)
    w1 = u(ks[0], (C1_OUT, EMBED_DIM, C1_K), (EMBED_DIM * C1_K) ** -0.5)
    b1 = u(ks[1], (C1_OUT,), (EMBED_DIM * C1_K) ** -0.5)
    w2 = u(ks[2], (C2_OUT, C1_OUT, C2_K), (C1_OUT * C2_K) ** -0.5)
    b2 = u(ks[3], (C2_OUT,), (C1_OUT * C2_K) ** -0.5)
    wf1 = u(ks[4], (FC1_OUT, FC1_IN), FC1_IN ** -0.5)
    bf1 = u(ks[5], (FC1_OUT,), FC1_IN ** -0.5)
    wf2 = u(ks[6], (FC2_OUT, FC1_OUT), FC1_OUT ** -0.5)
    bf2 = u(ks[7], (FC2_OUT,), FC1_OUT ** -0.5)
    return (w1, b1, w2, b2, wf1, bf1, wf2, bf2)


if __name__ == "__main__":
    key = jax.random.PRNGKey(0)
    k_x, k_p = jax.random.split(key)
    B = 2
    x = jax.random.normal(k_x, (B, SEQ_LEN, EMBED_DIM), jnp.float32)
    params = init_params(k_p)

    fwd = jax.jit(connections_cnn_pallas)
    out = jax.block_until_ready(fwd(x, params))
    ref = jax.block_until_ready(connections_cnn_ref(x, params))

    assert out.shape == (B, 16, NUM_GROUPS), out.shape
    # bf16 matmul inputs / bf16 output store vs f32 reference -> loose tol.
    err = float(jnp.max(jnp.abs(out - ref)))
    assert err < 2e-2, f"max abs err {err}"
    print("KERNEL_OK")
</pallas_src>

<mosaic_0001>
module attributes {stable_mosaic.version = 11 : i64} {
  func.func @connections_kernel(%arg0: i32, %arg1: memref<16x16x32xbf16, #tpu.memory_space<vmem>>, %arg2: memref<2x32x64xbf16, #tpu.memory_space<vmem>>, %arg3: memref<1x64xf32, #tpu.memory_space<vmem>>, %arg4: memref<192x128xbf16, #tpu.memory_space<vmem>>, %arg5: memref<1x128xf32, #tpu.memory_space<vmem>>, %arg6: memref<3x256x128xbf16, #tpu.memory_space<vmem>>, %arg7: memref<1x128xf32, #tpu.memory_space<vmem>>, %arg8: memref<128x128xbf16, #tpu.memory_space<vmem>>, %arg9: memref<1x128xf32, #tpu.memory_space<vmem>>, %arg10: memref<16x128xbf16, #tpu.memory_space<vmem>>) attributes {dimension_semantics = [#tpu.dimension_semantics<parallel>], iteration_bounds = array<i64: 1>, scalar_prefetch = 0 : i64, scratch_operands = 0 : i64, tpu.core_type = #tpu.core_type<tc>, window_params = [{transform_indices = @transform_0, window_bounds = array<i64: 16, 16, 32>}, {pipeline_mode = #tpu.pipeline_mode<synchronous>, transform_indices = @transform_1, window_bounds = array<i64: 2, 32, 64>}, {pipeline_mode = #tpu.pipeline_mode<synchronous>, transform_indices = @transform_2, window_bounds = array<i64: 1, 64>}, {pipeline_mode = #tpu.pipeline_mode<synchronous>, transform_indices = @transform_3, window_bounds = array<i64: 192, 128>}, {pipeline_mode = #tpu.pipeline_mode<synchronous>, transform_indices = @transform_4, window_bounds = array<i64: 1, 128>}, {pipeline_mode = #tpu.pipeline_mode<synchronous>, transform_indices = @transform_5, window_bounds = array<i64: 3, 256, 128>}, {pipeline_mode = #tpu.pipeline_mode<synchronous>, transform_indices = @transform_6, window_bounds = array<i64: 1, 128>}, {pipeline_mode = #tpu.pipeline_mode<synchronous>, transform_indices = @transform_7, window_bounds = array<i64: 128, 128>}, {pipeline_mode = #tpu.pipeline_mode<synchronous>, transform_indices = @transform_8, window_bounds = array<i64: 1, 128>}, {transform_indices = @transform_9, window_bounds = array<i64: 16, 128>}]} {
    %c0 = arith.constant 0 : index
    %c0_0 = arith.constant 0 : index
    %c0_1 = arith.constant 0 : index
    %0 = vector.load %arg1[%c0, %c0_0, %c0_1] : memref<16x16x32xbf16, #tpu.memory_space<vmem>>, vector<16x16x32xbf16>
    %1 = vector.extract_strided_slice %0 {offsets = [0, 0, 0], sizes = [15, 16, 32], strides = [1, 1, 1]} : vector<16x16x32xbf16> to vector<15x16x32xbf16>
    %2 = vector.shape_cast %1 : vector<15x16x32xbf16> to vector<240x32xbf16>
    %c0_2 = arith.constant 0 : index
    %c0_3 = arith.constant 0 : index
    %c0_4 = arith.constant 0 : index
    %3 = vector.load %arg2[%c0_2, %c0_3, %c0_4] : memref<2x32x64xbf16, #tpu.memory_space<vmem>>, vector<1x32x64xbf16>
    %4 = vector.shape_cast %3 : vector<1x32x64xbf16> to vector<32x64xbf16>
    %cst = arith.constant dense<0.000000e+00> : vector<240x64xf32>
    %5 = tpu.matmul %2, %4, %cst {dimension_numbers = #tpu.dot_dimension_numbers<[1], [0], [0], [1], [0, 0, 1, 1], [], []>} : vector<240x32xbf16>, vector<32x64xbf16>, vector<240x64xf32> -> vector<240x64xf32>
    %6 = vector.extract_strided_slice %0 {offsets = [1, 0, 0], sizes = [15, 16, 32], strides = [1, 1, 1]} : vector<16x16x32xbf16> to vector<15x16x32xbf16>
    %7 = vector.shape_cast %6 : vector<15x16x32xbf16> to vector<240x32xbf16>
    %c1 = arith.constant 1 : index
    %c0_5 = arith.constant 0 : index
    %c0_6 = arith.constant 0 : index
    %8 = vector.load %arg2[%c1, %c0_5, %c0_6] : memref<2x32x64xbf16, #tpu.memory_space<vmem>>, vector<1x32x64xbf16>
    %9 = vector.shape_cast %8 : vector<1x32x64xbf16> to vector<32x64xbf16>
    %cst_7 = arith.constant dense<0.000000e+00> : vector<240x64xf32>
    %10 = tpu.matmul %7, %9, %cst_7 {dimension_numbers = #tpu.dot_dimension_numbers<[1], [0], [0], [1], [0, 0, 1, 1], [], []>} : vector<240x32xbf16>, vector<32x64xbf16>, vector<240x64xf32> -> vector<240x64xf32>
    %11 = arith.addf %5, %10 : vector<240x64xf32>
    %c0_8 = arith.constant 0 : index
    %c0_9 = arith.constant 0 : index
    %12 = vector.load %arg3[%c0_8, %c0_9] : memref<1x64xf32, #tpu.memory_space<vmem>>, vector<1x64xf32>
    %13 = vector.broadcast %12 : vector<1x64xf32> to vector<240x64xf32>
    %14 = arith.addf %11, %13 : vector<240x64xf32>
    %cst_10 = arith.constant 0.000000e+00 : f32
    %15 = vector.broadcast %cst_10 : f32 to vector<240x64xf32>
    %16 = arith.maximumf %14, %15 : vector<240x64xf32>
    %17 = vector.shape_cast %16 : vector<240x64xf32> to vector<15x16x64xf32>
    %18 = arith.truncf %17 : vector<15x16x64xf32> to vector<15x16x64xbf16>
    %19 = vector.extract_strided_slice %18 {offsets = [0, 0, 0], sizes = [13, 16, 64], strides = [1, 1, 1]} : vector<15x16x64xbf16> to vector<13x16x64xbf16>
    %20 = vector.extract_strided_slice %18 {offsets = [1, 0, 0], sizes = [13, 16, 64], strides = [1, 1, 1]} : vector<15x16x64xbf16> to vector<13x16x64xbf16>
    %21 = vector.extract_strided_slice %18 {offsets = [2, 0, 0], sizes = [13, 16, 64], strides = [1, 1, 1]} : vector<15x16x64xbf16> to vector<13x16x64xbf16>
    %22 = tpu.concatenate %19, %20, %21 in 2 : vector<13x16x64xbf16>, vector<13x16x64xbf16>, vector<13x16x64xbf16> -> vector<13x16x192xbf16>
    %23 = vector.shape_cast %22 : vector<13x16x192xbf16> to vector<208x192xbf16>
    %c0_11 = arith.constant 0 : index
    %c0_12 = arith.constant 0 : index
    %24 = vector.load %arg4[%c0_11, %c0_12] : memref<192x128xbf16, #tpu.memory_space<vmem>>, vector<192x128xbf16>
    %cst_13 = arith.constant dense<0.000000e+00> : vector<208x128xf32>
    %25 = tpu.matmul %23, %24, %cst_13 {dimension_numbers = #tpu.dot_dimension_numbers<[1], [0], [0], [1], [0, 0, 1, 1], [], []>} : vector<208x192xbf16>, vector<192x128xbf16>, vector<208x128xf32> -> vector<208x128xf32>
    %c0_14 = arith.constant 0 : index
    %c0_15 = arith.constant 0 : index
    %26 = vector.load %arg5[%c0_14, %c0_15] : memref<1x128xf32, #tpu.memory_space<vmem>>, vector<1x128xf32>
    %27 = vector.broadcast %26 : vector<1x128xf32> to vector<208x128xf32>
    %28 = arith.addf %25, %27 : vector<208x128xf32>
    %cst_16 = arith.constant 0.000000e+00 : f32
    %29 = vector.broadcast %cst_16 : f32 to vector<208x128xf32>
    %30 = arith.maximumf %28, %29 : vector<208x128xf32>
    %31 = vector.shape_cast %30 : vector<208x128xf32> to vector<13x16x128xf32>
    %c0_17 = arith.constant 0 : index
    %c0_18 = arith.constant 0 : index
    %32 = vector.load %arg7[%c0_17, %c0_18] : memref<1x128xf32, #tpu.memory_space<vmem>>, vector<1x128xf32>
    %33 = vector.extract_strided_slice %31 {offsets = [0, 0, 0], sizes = [1, 16, 128], strides = [1, 1, 1]} : vector<13x16x128xf32> to vector<1x16x128xf32>
    %34 = vector.shape_cast %33 : vector<1x16x128xf32> to vector<16x128xf32>
    %35 = vector.extract_strided_slice %31 {offsets = [1, 0, 0], sizes = [1, 16, 128], strides = [1, 1, 1]} : vector<13x16x128xf32> to vector<1x16x128xf32>
    %36 = vector.shape_cast %35 : vector<1x16x128xf32> to vector<16x128xf32>
    %37 = arith.maximumf %34, %36 : vector<16x128xf32>
    %38 = vector.extract_strided_slice %31 {offsets = [2, 0, 0], sizes = [1, 16, 128], strides = [1, 1, 1]} : vector<13x16x128xf32> to vector<1x16x128xf32>
    %39 = vector.shape_cast %38 : vector<1x16x128xf32> to vector<16x128xf32>
    %40 = vector.extract_strided_slice %31 {offsets = [3, 0, 0], sizes = [1, 16, 128], strides = [1, 1, 1]} : vector<13x16x128xf32> to vector<1x16x128xf32>
    %41 = vector.shape_cast %40 : vector<1x16x128xf32> to vector<16x128xf32>
    %42 = arith.maximumf %39, %41 : vector<16x128xf32>
    %43 = tpu.concatenate %37, %42 in 1 : vector<16x128xf32>, vector<16x128xf32> -> vector<16x256xf32>
    %44 = arith.truncf %43 : vector<16x256xf32> to vector<16x256xbf16>
    %c0_19 = arith.constant 0 : index
    %c0_20 = arith.constant 0 : index
    %c0_21 = arith.constant 0 : index
    %45 = vector.load %arg6[%c0_19, %c0_20, %c0_21] : memref<3x256x128xbf16, #tpu.memory_space<vmem>>, vector<1x256x128xbf16>
    %46 = vector.shape_cast %45 : vector<1x256x128xbf16> to vector<256x128xbf16>
    %cst_22 = arith.constant dense<0.000000e+00> : vector<16x128xf32>
    %47 = tpu.matmul %44, %46, %cst_22 {dimension_numbers = #tpu.dot_dimension_numbers<[1], [0], [0], [1], [0, 0, 1, 1], [], []>} : vector<16x256xbf16>, vector<256x128xbf16>, vector<16x128xf32> -> vector<16x128xf32>
    %48 = vector.broadcast %32 : vector<1x128xf32> to vector<16x128xf32>
    %49 = arith.addf %48, %47 : vector<16x128xf32>
    %50 = vector.extract_strided_slice %31 {offsets = [4, 0, 0], sizes = [1, 16, 128], strides = [1, 1, 1]} : vector<13x16x128xf32> to vector<1x16x128xf32>
    %51 = vector.shape_cast %50 : vector<1x16x128xf32> to vector<16x128xf32>
    %52 = vector.extract_strided_slice %31 {offsets = [5, 0, 0], sizes = [1, 16, 128], strides = [1, 1, 1]} : vector<13x16x128xf32> to vector<1x16x128xf32>
    %53 = vector.shape_cast %52 : vector<1x16x128xf32> to vector<16x128xf32>
    %54 = arith.maximumf %51, %53 : vector<16x128xf32>
    %55 = vector.extract_strided_slice %31 {offsets = [6, 0, 0], sizes = [1, 16, 128], strides = [1, 1, 1]} : vector<13x16x128xf32> to vector<1x16x128xf32>
    %56 = vector.shape_cast %55 : vector<1x16x128xf32> to vector<16x128xf32>
    %57 = vector.extract_strided_slice %31 {offsets = [7, 0, 0], sizes = [1, 16, 128], strides = [1, 1, 1]} : vector<13x16x128xf32> to vector<1x16x128xf32>
    %58 = vector.shape_cast %57 : vector<1x16x128xf32> to vector<16x128xf32>
    %59 = arith.maximumf %56, %58 : vector<16x128xf32>
    %60 = tpu.concatenate %54, %59 in 1 : vector<16x128xf32>, vector<16x128xf32> -> vector<16x256xf32>
    %61 = arith.truncf %60 : vector<16x256xf32> to vector<16x256xbf16>
    %c1_23 = arith.constant 1 : index
    %c0_24 = arith.constant 0 : index
    %c0_25 = arith.constant 0 : index
    %62 = vector.load %arg6[%c1_23, %c0_24, %c0_25] : memref<3x256x128xbf16, #tpu.memory_space<vmem>>, vector<1x256x128xbf16>
    %63 = vector.shape_cast %62 : vector<1x256x128xbf16> to vector<256x128xbf16>
    %cst_26 = arith.constant dense<0.000000e+00> : vector<16x128xf32>
    %64 = tpu.matmul %61, %63, %cst_26 {dimension_numbers = #tpu.dot_dimension_numbers<[1], [0], [0], [1], [0, 0, 1, 1], [], []>} : vector<16x256xbf16>, vector<256x128xbf16>, vector<16x128xf32> -> vector<16x128xf32>
    %65 = arith.addf %49, %64 : vector<16x128xf32>
    %66 = vector.extract_strided_slice %31 {offsets = [8, 0, 0], sizes = [1, 16, 128], strides = [1, 1, 1]} : vector<13x16x128xf32> to vector<1x16x128xf32>
    %67 = vector.shape_cast %66 : vector<1x16x128xf32> to vector<16x128xf32>
    %68 = vector.extract_strided_slice %31 {offsets = [9, 0, 0], sizes = [1, 16, 128], strides = [1, 1, 1]} : vector<13x16x128xf32> to vector<1x16x128xf32>
    %69 = vector.shape_cast %68 : vector<1x16x128xf32> to vector<16x128xf32>
    %70 = arith.maximumf %67, %69 : vector<16x128xf32>
    %71 = vector.extract_strided_slice %31 {offsets = [10, 0, 0], sizes = [1, 16, 128], strides = [1, 1, 1]} : vector<13x16x128xf32> to vector<1x16x128xf32>
    %72 = vector.shape_cast %71 : vector<1x16x128xf32> to vector<16x128xf32>
    %73 = vector.extract_strided_slice %31 {offsets = [11, 0, 0], sizes = [1, 16, 128], strides = [1, 1, 1]} : vector<13x16x128xf32> to vector<1x16x128xf32>
    %74 = vector.shape_cast %73 : vector<1x16x128xf32> to vector<16x128xf32>
    %75 = arith.maximumf %72, %74 : vector<16x128xf32>
    %76 = tpu.concatenate %70, %75 in 1 : vector<16x128xf32>, vector<16x128xf32> -> vector<16x256xf32>
    %77 = arith.truncf %76 : vector<16x256xf32> to vector<16x256xbf16>
    %c2 = arith.constant 2 : index
    %c0_27 = arith.constant 0 : index
    %c0_28 = arith.constant 0 : index
    %78 = vector.load %arg6[%c2, %c0_27, %c0_28] : memref<3x256x128xbf16, #tpu.memory_space<vmem>>, vector<1x256x128xbf16>
    %79 = vector.shape_cast %78 : vector<1x256x128xbf16> to vector<256x128xbf16>
    %cst_29 = arith.constant dense<0.000000e+00> : vector<16x128xf32>
    %80 = tpu.matmul %77, %79, %cst_29 {dimension_numbers = #tpu.dot_dimension_numbers<[1], [0], [0], [1], [0, 0, 1, 1], [], []>} : vector<16x256xbf16>, vector<256x128xbf16>, vector<16x128xf32> -> vector<16x128xf32>
    %81 = arith.addf %65, %80 : vector<16x128xf32>
    %cst_30 = arith.constant 0.000000e+00 : f32
    %82 = vector.broadcast %cst_30 : f32 to vector<16x128xf32>
    %83 = arith.maximumf %81, %82 : vector<16x128xf32>
    %84 = arith.truncf %83 : vector<16x128xf32> to vector<16x128xbf16>
    %c0_31 = arith.constant 0 : index
    %c0_32 = arith.constant 0 : index
    %85 = vector.load %arg8[%c0_31, %c0_32] : memref<128x128xbf16, #tpu.memory_space<vmem>>, vector<128x128xbf16>
    %cst_33 = arith.constant dense<0.000000e+00> : vector<16x128xf32>
    %86 = tpu.matmul %84, %85, %cst_33 {dimension_numbers = #tpu.dot_dimension_numbers<[1], [0], [0], [1], [0, 0, 1, 1], [], []>} : vector<16x128xbf16>, vector<128x128xbf16>, vector<16x128xf32> -> vector<16x128xf32>
    %c0_34 = arith.constant 0 : index
    %c0_35 = arith.constant 0 : index
    %87 = vector.load %arg9[%c0_34, %c0_35] : memref<1x128xf32, #tpu.memory_space<vmem>>, vector<1x128xf32>
    %88 = vector.broadcast %87 : vector<1x128xf32> to vector<16x128xf32>
    %89 = arith.addf %86, %88 : vector<16x128xf32>
    %90 = arith.negf %89 : vector<16x128xf32>
    %91 = math.exp %90 : vector<16x128xf32>
    %cst_36 = arith.constant 1.000000e+00 : f32
    %92 = vector.broadcast %cst_36 : f32 to vector<16x128xf32>
    %93 = arith.addf %92, %91 : vector<16x128xf32>
    %94 = arith.divf %92, %93 : vector<16x128xf32>
    %95 = arith.truncf %94 : vector<16x128xf32> to vector<16x128xbf16>
    %c0_37 = arith.constant 0 : index
    %c0_38 = arith.constant 0 : index
    %96 = vector.load %arg10[%c0_37, %c0_38] : memref<16x128xbf16, #tpu.memory_space<vmem>>, vector<16x128xbf16>
    tpu.vector_store %arg10[%c0_37, %c0_38], %95 {strides = array<i32>} : memref<16x128xbf16, #tpu.memory_space<vmem>>, vector<16x128xbf16>,
    return
  }
  func.func @transform_0(%arg0: i32) -> (i32, i32, i32) {
    %c0_i32 = arith.constant 0 : i32
    %c0_i32_0 = arith.constant 0 : i32
    %c0_i32_1 = arith.constant 0 : i32
    return %c0_i32, %arg0, %c0_i32_0 : i32, i32, i32
  }
  func.func @transform_1(%arg0: i32) -> (i32, i32, i32) {
    %c0_i32 = arith.constant 0 : i32
    %c0_i32_0 = arith.constant 0 : i32
    %c0_i32_1 = arith.constant 0 : i32
    %c0_i32_2 = arith.constant 0 : i32
    return %c0_i32, %c0_i32_0, %c0_i32_1 : i32, i32, i32
  }
  func.func @transform_2(%arg0: i32) -> (i32, i32) {
    %c0_i32 = arith.constant 0 : i32
    %c0_i32_0 = arith.constant 0 : i32
    %c0_i32_1 = arith.constant 0 : i32
    return %c0_i32, %c0_i32_0 : i32, i32
  }
  func.func @transform_3(%arg0: i32) -> (i32, i32) {
    %c0_i32 = arith.constant 0 : i32
    %c0_i32_0 = arith.constant 0 : i32
    %c0_i32_1 = arith.constant 0 : i32
    return %c0_i32, %c0_i32_0 : i32, i32
  }
  func.func @transform_4(%arg0: i32) -> (i32, i32) {
    %c0_i32 = arith.constant 0 : i32
    %c0_i32_0 = arith.constant 0 : i32
    %c0_i32_1 = arith.constant 0 : i32
    return %c0_i32, %c0_i32_0 : i32, i32
  }
  func.func @transform_5(%arg0: i32) -> (i32, i32, i32) {
    %c0_i32 = arith.constant 0 : i32
    %c0_i32_0 = arith.constant 0 : i32
    %c0_i32_1 = arith.constant 0 : i32
    %c0_i32_2 = arith.constant 0 : i32
    return %c0_i32, %c0_i32_0, %c0_i32_1 : i32, i32, i32
  }
  func.func @transform_6(%arg0: i32) -> (i32, i32) {
    %c0_i32 = arith.constant 0 : i32
    %c0_i32_0 = arith.constant 0 : i32
    %c0_i32_1 = arith.constant 0 : i32
    return %c0_i32, %c0_i32_0 : i32, i32
  }
  func.func @transform_7(%arg0: i32) -> (i32, i32) {
    %c0_i32 = arith.constant 0 : i32
    %c0_i32_0 = arith.constant 0 : i32
    %c0_i32_1 = arith.constant 0 : i32
    return %c0_i32, %c0_i32_0 : i32, i32
  }
  func.func @transform_8(%arg0: i32) -> (i32, i32) {
    %c0_i32 = arith.constant 0 : i32
    %c0_i32_0 = arith.constant 0 : i32
    %c0_i32_1 = arith.constant 0 : i32
    return %c0_i32, %c0_i32_0 : i32, i32
  }
  func.func @transform_9(%arg0: i32) -> (i32, i32) {
    %c0_i32 = arith.constant 0 : i32
    %c0_i32_0 = arith.constant 0 : i32
    return %arg0, %c0_i32 : i32, i32
  }
}

</mosaic_0001>

<bundles_post_ra>
// kernel: connections_cnn_pallas.1
= control target key start
LH: loop header
LB: loop body
LE: loop exit
PB: predicated region body
PF: predicated region fallthrough
CT: control target
= control target key end

     0   :  { %v2249_v0 = vmov 0.0   ;;  %vm2250_vm0 = vmmov 0   ;;  %vm161_vm1 = vcmask 261120   ;;  %v2251_v18 = vmov 0   ;;  %s2849_s1 = inlined_call_operand.vmem [shape: bf16[2,32,64], index: 1, kind: input, shape index: {}]   ;;  %s2850_s0 = inlined_call_operand.vmem [shape: bf16[16,16,32], index: 0, kind: input, shape index: {}]   ;;  %s2851_s3 = inlined_call_operand.vmem [shape: bf16[192,128], index: 3, kind: input, shape index: {}]   ;;  %s2852_s2 = inlined_call_operand.vmem [shape: f32[1,64], index: 2, kind: input, shape index: {}]   ;;  %s2853_s5 = inlined_call_operand.vmem [shape: bf16[3,256,128], index: 5, kind: input, shape index: {}]   ;;  %s2854_s4 = inlined_call_operand.vmem [shape: f32[1,128], index: 4, kind: input, shape index: {}]   ;;  %s2855_s7 = inlined_call_operand.vmem [shape: bf16[128,128], index: 7, kind: input, shape index: {}]   ;;  %s2856_s6 = inlined_call_operand.vmem [shape: f32[1,128], index: 6, kind: input, shape index: {}]   ;;  %s2857_s8 = inlined_call_operand.vmem [shape: f32[1,128], index: 8, kind: input, shape index: {}]   ;;  %s2858_s9 = inlined_call_operand.vmem [shape: bf16[16,128], index: 9, kind: output, shape index: {}]  }
   0x1   :  { %2001 = vmatprep.subr.bf16.mxu0 %v2249_v0  ;;  %2065 = vmatprep.subr.bf16.mxu1 %v2249_v0  ;;  %v2153_v1 = vld [vmem:[%s2849_s1 + $0x18] sm:$0xff]   ;;  %v2154_v2 = vld [vmem:[%s2849_s1 + $0x8] sm:$0xff]   ;;  %v2155_v3 = vld [vmem:[%s2849_s1 + $0x10] sm:$0xff]   ;;  %vm654_vm2 = vcmask 523264  }
   0x2   :  { %2005 = vmatprep.mubr.msk.bf16.mxu0 %vm2250_vm0, %v2249_v0  ;;  %2069 = vmatprep.mubr.msk.bf16.mxu1 %vm2250_vm0, %v2249_v0  ;;  %v2156_v4 = vld [vmem:[%s2849_s1] sm:$0xff]   ;;  %v2157_v5 = vld [vmem:[%s2850_s0 + $0x8] sm:$0xff]   ;;  %v2159_v7 = vld [vmem:[%s2850_s0 + $0x10] sm:$0xff]  }
   0x3   :  { %2002 = vmatpush3.bf16.msra.mxu0 %v2153_v1  ;;  %2066 = vmatpush3.bf16.msra.mxu1 %v2154_v2  ;;  %v2158_v6 = vld [vmem:[%s2850_s0] sm:$0xff]   ;;  %v2160_v8 = vld [vmem:[%s2850_s0 + $0x18] sm:$0xff]   ;;  %v2162_v10 = vld [vmem:[%s2850_s0 + $0x28] sm:$0xff]  }
   0x4   :  { %2003 = vmatprep.subr.bf16.mxu0 %v2249_v0  ;;  %2067 = vmatprep.subr.bf16.mxu1 %v2249_v0  ;;  %v2161_v9 = vld [vmem:[%s2850_s0 + $0x20] sm:$0xff]   ;;  %v2163_v11 = vld [vmem:[%s2850_s0 + $0x30] sm:$0xff]   ;;  %v2164_v12 = vld [vmem:[%s2850_s0 + $0x38] sm:$0xff]  }
   0x5   :  { %v2165_v13 = vld [vmem:[%s2850_s0 + $0x40] sm:$0xff]   ;;  %v2166_v14 = vld [vmem:[%s2850_s0 + $0x48] sm:$0xff]   ;;  %v2167_v15 = vld [vmem:[%s2850_s0 + $0x50] sm:$0xff]  }
   0x6   :  { %v2168_v16 = vld [vmem:[%s2850_s0 + $0x58] sm:$0xff]   ;;  %v2169_v17 = vld [vmem:[%s2850_s0 + $0x60] sm:$0xff]   ;;  %v2170_v20 = vld [vmem:[%s2850_s0 + $0x68] sm:$0xff]  }
   0x7   :  { %2004 = vmatpush3.bf16.msra.mxu0 %v2155_v3  ;;  %2068 = vmatpush3.bf16.msra.mxu1 %v2156_v4  ;;  %v2172_v19 = vld [vmem:[%s2851_s3 + $0x38] sm:$0xff]   ;;  %v2174_v21 = vld [vmem:[%s2851_s3 + $0x30] sm:$0xff]   ;;  %v2175_v23 = vld [vmem:[%s2851_s3 + $0x28] sm:$0xff]  }
   0x8   :  { %838 = vmatprep.subr.bf16.mxu0 %v2251_v18  ;;  %v2171_v22 = vld [vmem:[%s2850_s0 + $0x70] sm:$0xff]   ;;  %v2173_v24 = vld [vmem:[%s2850_s0 + $0x78] sm:$0xff]   ;;  %v2176_v25 = vld [vmem:[%s2851_s3 + $0x20] sm:$0xff]  }
   0x9   :  { %v2177_v26 = vld [vmem:[%s2851_s3 + $0x18] sm:$0xff]   ;;  %v2178_v27 = vld [vmem:[%s2851_s3 + $0x10] sm:$0xff]   ;;  %v2179_v28 = vld [vmem:[%s2851_s3 + $0x8] sm:$0xff]  }
   0xa   :  { %2006 = vmatmul.mubr.msk.bf16.vlgmr.msra.gmra.mxu0 %vm161_vm1, %v2157_v5  ;;  %2070 = vmatmul.mubr.msk.bf16.vlgmr.msra.gmra.mxu1 %vm161_vm1, %v2158_v6  ;;  %v2180_v29 = vld [vmem:[%s2851_s3] sm:$0xff]   ;;  %v2181_v30 = vld [vmem:[%s2851_s3 + $0x58] sm:$0xff]   ;;  %v2182_v31 = vld [vmem:[%s2851_s3 + $0x50] sm:$0xff]  }
   0xb   :  { %2009 = vmatprep.mubr.msk.bf16.mxu0 %vm2250_vm0, %v2249_v0  ;;  %2073 = vmatprep.mubr.msk.bf16.mxu1 %vm2250_vm0, %v2249_v0  ;;  %v2183_v32 = vld [vmem:[%s2851_s3 + $0x48] sm:$0xff]   ;;  %v2184_v33 = vld [vmem:[%s2851_s3 + $0x40] sm:$0xff]  }
   0xc   :  { %839 = vmatpush1.bf16.msra.mxu0 %v2172_v19  ;;  %v2496_v38 = vld [vmem:[%s2852_s2] ss:$0 sm:$0xff]  ;;  %s2252_s2 = smov 64  }
   0xd   :  { %840 = vmatprep.subr.bf16.mxu0 %v2251_v18 }
  0x10   :  { %841 = vmatpush1.bf16.msra.mxu0 %v2174_v21 }
  0x11   :  { %842 = vmatprep.subr.bf16.mxu0 %v2251_v18 }
  0x12   :  { %2010 = vmatmul.mubr.msk.bf16.gmra.mxu0 %vm161_vm1, %v2159_v7  ;;  %2074 = vmatmul.mubr.msk.bf16.gmra.mxu1 %vm161_vm1, %v2157_v5 }
  0x13   :  { %2013 = vmatprep.mubr.msk.bf16.mxu0 %vm2250_vm0, %v2249_v0  ;;  %2077 = vmatprep.mubr.msk.bf16.mxu1 %vm2250_vm0, %v2249_v0 }
  0x14   :  { %843 = vmatpush1.bf16.msra.mxu0 %v2175_v23 }
  0x15   :  { %844 = vmatprep.subr.bf16.mxu0 %v2251_v18 }
  0x18   :  { %845 = vmatpush1.bf16.msra.mxu0 %v2176_v25 }
  0x19   :  { %846 = vmatprep.subr.bf16.mxu0 %v2251_v18 }
  0x1a   :  { %2014 = vmatmul.mubr.msk.bf16.gmra.mxu0 %vm161_vm1, %v2160_v8  ;;  %2078 = vmatmul.mubr.msk.bf16.gmra.mxu1 %vm161_vm1, %v2159_v7 }
  0x1b   :  { %2017 = vmatprep.mubr.msk.bf16.mxu0 %vm2250_vm0, %v2249_v0  ;;  %2081 = vmatprep.mubr.msk.bf16.mxu1 %vm2250_vm0, %v2249_v0 }
  0x1c   :  { %847 = vmatpush1.bf16.msra.mxu0 %v2177_v26 }
  0x1d   :  { %848 = vmatprep.subr.bf16.mxu0 %v2251_v18 }
  0x20   :  { %849 = vmatpush1.bf16.msra.mxu0 %v2178_v27 }
  0x21   :  { %850 = vmatprep.subr.bf16.mxu0 %v2251_v18 }
  0x22   :  { %2018 = vmatmul.mubr.msk.bf16.gmra.mxu0 %vm161_vm1, %v2161_v9  ;;  %2082 = vmatmul.mubr.msk.bf16.gmra.mxu1 %vm161_vm1, %v2160_v8 }
  0x23   :  { %2021 = vmatprep.mubr.msk.bf16.mxu0 %vm2250_vm0, %v2249_v0  ;;  %2085 = vmatprep.mubr.msk.bf16.mxu1 %vm2250_vm0, %v2249_v0 }
  0x24   :  { %851 = vmatpush1.bf16.msra.mxu0 %v2179_v28 }
  0x25   :  { %852 = vmatprep.subr.bf16.mxu0 %v2251_v18 }
  0x28   :  { %853 = vmatpush1.bf16.msra.mxu0 %v2180_v29 }
  0x29   :  { %862 = vmatprep.subr.bf16.mxu0 %v2251_v18 }
  0x2a   :  { %2022 = vmatmul.mubr.msk.bf16.gmra.mxu0 %vm161_vm1, %v2162_v10  ;;  %2086 = vmatmul.mubr.msk.bf16.gmra.mxu1 %vm161_vm1, %v2161_v9 }
  0x2b   :  { %2025 = vmatprep.mubr.msk.bf16.mxu0 %vm2250_vm0, %v2249_v0  ;;  %2089 = vmatprep.mubr.msk.bf16.mxu1 %vm2250_vm0, %v2249_v0 }
  0x2c   :  { %863 = vmatpush2.bf16.msra.mxu0 %v2181_v30 }
  0x2d   :  { %864 = vmatprep.subr.bf16.mxu0 %v2251_v18 }
  0x30   :  { %865 = vmatpush2.bf16.msra.mxu0 %v2182_v31 }
  0x31   :  { %866 = vmatprep.subr.bf16.mxu0 %v2251_v18 }
  0x32   :  { %2026 = vmatmul.mubr.msk.bf16.gmra.mxu0 %vm161_vm1, %v2163_v11  ;;  %2090 = vmatmul.mubr.msk.bf16.gmra.mxu1 %vm161_vm1, %v2162_v10 }
  0x33   :  { %2029 = vmatprep.mubr.msk.bf16.mxu0 %vm2250_vm0, %v2249_v0  ;;  %2093 = vmatprep.mubr.msk.bf16.mxu1 %vm2250_vm0, %v2249_v0 }
  0x34   :  { %867 = vmatpush2.bf16.msra.mxu0 %v2183_v32 }
  0x35   :  { %868 = vmatprep.subr.bf16.mxu0 %v2251_v18 }
  0x38   :  { %869 = vmatpush2.bf16.msra.mxu0 %v2184_v33 }
  0x3a   :  { %2030 = vmatmul.mubr.msk.bf16.gmra.mxu0 %vm161_vm1, %v2164_v12  ;;  %2094 = vmatmul.mubr.msk.bf16.gmra.mxu1 %vm161_vm1, %v2163_v11 }
  0x3b   :  { %2033 = vmatprep.mubr.msk.bf16.mxu0 %vm2250_vm0, %v2249_v0  ;;  %2097 = vmatprep.mubr.msk.bf16.mxu1 %vm2250_vm0, %v2249_v0 }
  0x42   :  { %2034 = vmatmul.mubr.msk.bf16.gmra.mxu0 %vm161_vm1, %v2165_v13  ;;  %2098 = vmatmul.mubr.msk.bf16.gmra.mxu1 %vm161_vm1, %v2164_v12 }
  0x43   :  { %2037 = vmatprep.mubr.msk.bf16.mxu0 %vm2250_vm0, %v2249_v0  ;;  %2101 = vmatprep.mubr.msk.bf16.mxu1 %vm2250_vm0, %v2249_v0 }
  0x4a   :  { %2038 = vmatmul.mubr.msk.bf16.gmra.mxu0 %vm161_vm1, %v2166_v14  ;;  %2102 = vmatmul.mubr.msk.bf16.gmra.mxu1 %vm161_vm1, %v2165_v13 }
  0x4b   :  { %2041 = vmatprep.mubr.msk.bf16.mxu0 %vm2250_vm0, %v2249_v0  ;;  %2105 = vmatprep.mubr.msk.bf16.mxu1 %vm2250_vm0, %v2249_v0 }
  0x52   :  { %2042 = vmatmul.mubr.msk.bf16.gmra.mxu0 %vm161_vm1, %v2167_v15  ;;  %2106 = vmatmul.mubr.msk.bf16.gmra.mxu1 %vm161_vm1, %v2166_v14 }
  0x53   :  { %2045 = vmatprep.mubr.msk.bf16.mxu0 %vm2250_vm0, %v2249_v0  ;;  %2109 = vmatprep.mubr.msk.bf16.mxu1 %vm2250_vm0, %v2249_v0 }
  0x5a   :  { %2046 = vmatmul.mubr.msk.bf16.gmra.mxu0 %vm161_vm1, %v2168_v16  ;;  %2110 = vmatmul.mubr.msk.bf16.gmra.mxu1 %vm161_vm1, %v2167_v15 }
  0x5b   :  { %2049 = vmatprep.mubr.msk.bf16.mxu0 %vm2250_vm0, %v2249_v0  ;;  %2113 = vmatprep.mubr.msk.bf16.mxu1 %vm2250_vm0, %v2249_v0 }
  0x62   :  { %2050 = vmatmul.mubr.msk.bf16.gmra.mxu0 %vm161_vm1, %v2169_v17  ;;  %2114 = vmatmul.mubr.msk.bf16.gmra.mxu1 %vm161_vm1, %v2168_v16 }
  0x63   :  { %2053 = vmatprep.mubr.msk.bf16.mxu0 %vm2250_vm0, %v2249_v0  ;;  %2117 = vmatprep.mubr.msk.bf16.mxu1 %vm2250_vm0, %v2249_v0 }
  0x6a   :  { %2054 = vmatmul.mubr.msk.bf16.gmra.mxu0 %vm161_vm1, %v2170_v20  ;;  %2118 = vmatmul.mubr.msk.bf16.gmra.mxu1 %vm161_vm1, %v2169_v17 }
  0x6b   :  { %2057 = vmatprep.mubr.msk.bf16.mxu0 %vm2250_vm0, %v2249_v0  ;;  %2121 = vmatprep.mubr.msk.bf16.mxu1 %vm2250_vm0, %v2249_v0 }
  0x72   :  { %2058 = vmatmul.mubr.msk.bf16.gmra.mxu0 %vm161_vm1, %v2171_v22  ;;  %2122 = vmatmul.mubr.msk.bf16.gmra.mxu1 %vm161_vm1, %v2170_v20 }
  0x73   :  { %2061 = vmatprep.mubr.msk.bf16.mxu0 %vm2250_vm0, %v2249_v0  ;;  %2125 = vmatprep.mubr.msk.bf16.mxu1 %vm2250_vm0, %v2249_v0 }
  0x7a   :  { %2062 = vmatmul.mubr.msk.bf16.gmra.mxu0 %vm161_vm1, %v2173_v24  ;;  %2126 = vmatmul.mubr.msk.bf16.gmra.mxu1 %vm161_vm1, %v2171_v22 }
  0xca   :  { %v241_v34 = vpop.f32.mrf.mxu0  ;;  %v414_v35 = vpop.f32.mrf.mxu1 }
  0xcb   :  { %v415_v36 = vadd.f32 %v414_v35, %v241_v34 }
  0xcc   :  { %v2007_v37 = vpop.f32.mrf.mxu0  ;;  %v2071_v39 = vpop.f32.mrf.mxu1 }
  0xcd   :  { %v540_v42 = vadd.f32 %v2496_v38, %v415_v36 }
  0xce   :  { %v244_v40 = vpop.f32.mrf.mxu0  ;;  %v417_v41 = vpop.f32.mrf.mxu1 }
  0xcf   :  { %v418_v43 = vadd.f32 %v417_v41, %v244_v40  ;;  %v570_v49 = vmax.f32 %v540_v42, 0.0 }
  0xd0   :  { %v2008_v44 = vpop.f32.mrf.mxu0  ;;  %v2072_v45 = vpop.f32.mrf.mxu1 }
  0xd1   :  { %v541_v46 = vadd.f32 %v2496_v38, %v418_v43 }
  0xd2   :  { %v249_v47 = vpop.f32.mrf.mxu0  ;;  %v422_v48 = vpop.f32.mrf.mxu1 }
  0xd3   :  { %v571_v50 = vmax.f32 %v541_v46, 0.0  ;;  %v423_v51 = vadd.f32 %v422_v48, %v249_v47 }
  0xd4   :  { %v2011_v52 = vpop.f32.mrf.mxu0  ;;  %v2075_v53 = vpop.f32.mrf.mxu1 }
  0xd5   :  { %v2500_v54 = vpack.c.bf16 %v571_v50, %v570_v49  ;;  %v542_v57 = vadd.f32 %v2496_v38, %v423_v51 }
  0xd6   :  { %v252_v55 = vpop.f32.mrf.mxu0  ;;  %v425_v56 = vpop.f32.mrf.mxu1 }
  0xd7   :  { %v426_v58 = vadd.f32 %v425_v56, %v252_v55  ;;  %v572_v1 = vmax.f32 %v542_v57, 0.0 }
  0xd8   :  { %v2012_v59 = vpop.f32.mrf.mxu0  ;;  %v2076_v60 = vpop.f32.mrf.mxu1 }
  0xd9   :  { %v543_v61 = vadd.f32 %v2496_v38, %v426_v58 }
  0xda   :  { %v257_v62 = vpop.f32.mrf.mxu0  ;;  %v430_v63 = vpop.f32.mrf.mxu1 }
  0xdb   :  { %v573_v2 = vmax.f32 %v543_v61, 0.0  ;;  %v431_v3 = vadd.f32 %v430_v63, %v257_v62 }
  0xdc   :  { %v2015_v4 = vpop.f32.mrf.mxu0  ;;  %v2079_v5 = vpop.f32.mrf.mxu1 }
  0xdd   :  { %v2504_v7 = vpack.c.bf16 %v573_v2, %v572_v1  ;;  %v544_v9 = vadd.f32 %v2496_v38, %v431_v3 }
  0xde   :  { %v260_v6 = vpop.f32.mrf.mxu0  ;;  %v433_v8 = vpop.f32.mrf.mxu1 }
  0xdf   :  { %v434_v10 = vadd.f32 %v433_v8, %v260_v6  ;;  %628 = vrot.lane.b32.xlu0 %v2504_v7, %s2252_s2  ;;  %v574_v16 = vmax.f32 %v544_v9, 0.0 }
  0xe0   :  { %v2016_v11 = vpop.f32.mrf.mxu0  ;;  %v2080_v12 = vpop.f32.mrf.mxu1 }
  0xe1   :  { %v545_v13 = vadd.f32 %v2496_v38, %v434_v10 }
  0xe2   :  { %v265_v14 = vpop.f32.mrf.mxu0  ;;  %v438_v15 = vpop.f32.mrf.mxu1 }
  0xe3   :  { %v575_v17 = vmax.f32 %v545_v13, 0.0  ;;  %v439_v18 = vadd.f32 %v438_v15, %v265_v14 }
  0xe4   :  { %v2019_v19 = vpop.f32.mrf.mxu0  ;;  %v2083_v20 = vpop.f32.mrf.mxu1 }
  0xe5   :  { %v2510_v22 = vpack.c.bf16 %v575_v17, %v574_v16  ;;  %v546_v24 = vadd.f32 %v2496_v38, %v439_v18 }
  0xe6   :  { %v268_v21 = vpop.f32.mrf.mxu0  ;;  %v441_v23 = vpop.f32.mrf.mxu1 }
  0xe7   :  { %v442_v25 = vadd.f32 %v441_v23, %v268_v21  ;;  %630 = vrot.lane.b32.xlu0 %v2510_v22, %s2252_s2  ;;  %1746 = vmatprep.mubr.msk.bf16.mxu0 %vm654_vm2, %v2510_v22  ;;  %v576_v31 = vmax.f32 %v546_v24, 0.0 }
  0xe8   :  { %v2020_v26 = vpop.f32.mrf.mxu0  ;;  %v2084_v27 = vpop.f32.mrf.mxu1 }
  0xe9   :  { %v547_v28 = vadd.f32 %v2496_v38, %v442_v25 }
  0xea   :  { %v273_v29 = vpop.f32.mrf.mxu0  ;;  %v446_v30 = vpop.f32.mrf.mxu1 }
  0xeb   :  { %v577_v32 = vmax.f32 %v547_v28, 0.0  ;;  %v447_v33 = vadd.f32 %v446_v30, %v273_v29 }
  0xec   :  { %v2023_v34 = vpop.f32.mrf.mxu0  ;;  %v2087_v35 = vpop.f32.mrf.mxu1 }
  0xed   :  { %v2518_v37 = vpack.c.bf16 %v577_v32, %v576_v31  ;;  %v548_v40 = vadd.f32 %v2496_v38, %v447_v33 }
  0xee   :  { %v276_v36 = vpop.f32.mrf.mxu0  ;;  %v449_v39 = vpop.f32.mrf.mxu1 }
  0xef   :  { %v450_v41 = vadd.f32 %v449_v39, %v276_v36  ;;  %632 = vrot.lane.b32.xlu1 %v2518_v37, %s2252_s2  ;;  %v578_v47 = vmax.f32 %v548_v40, 0.0 }
  0xf0   :  { %v2024_v42 = vpop.f32.mrf.mxu0  ;;  %v2088_v43 = vpop.f32.mrf.mxu1 }
  0xf1   :  { %v549_v44 = vadd.f32 %v2496_v38, %v450_v41 }
  0xf2   :  { %v281_v45 = vpop.f32.mrf.mxu0  ;;  %v454_v46 = vpop.f32.mrf.mxu1 }
  0xf3   :  { %v579_v48 = vmax.f32 %v549_v44, 0.0  ;;  %v455_v49 = vadd.f32 %v454_v46, %v281_v45 }
  0xf4   :  { %v2027_v50 = vpop.f32.mrf.mxu0  ;;  %v2091_v51 = vpop.f32.mrf.mxu1 }
  0xf5   :  { %v2524_v53 = vpack.c.bf16 %v579_v48, %v578_v47  ;;  %v550_v56 = vadd.f32 %v2496_v38, %v455_v49 }
  0xf6   :  { %v284_v52 = vpop.f32.mrf.mxu0  ;;  %v457_v55 = vpop.f32.mrf.mxu1 }
  0xf7   :  { %v458_v57 = vadd.f32 %v457_v55, %v284_v52  ;;  %634 = vrot.lane.b32.xlu1 %v2524_v53, %s2252_s2  ;;  %v580_v63 = vmax.f32 %v550_v56, 0.0 }
  0xf8   :  { %v2028_v58 = vpop.f32.mrf.mxu0  ;;  %v2092_v59 = vpop.f32.mrf.mxu1 }
  0xf9   :  { %v551_v60 = vadd.f32 %v2496_v38, %v458_v57 }
  0xfa   :  { %v289_v61 = vpop.f32.mrf.mxu0  ;;  %v462_v62 = vpop.f32.mrf.mxu1 }
  0xfb   :  { %v581_v1 = vmax.f32 %v551_v60, 0.0  ;;  %v463_v2 = vadd.f32 %v462_v62, %v289_v61 }
  0xfc   :  { %v2031_v3 = vpop.f32.mrf.mxu0  ;;  %v2095_v4 = vpop.f32.mrf.mxu1 }
  0xfd   :  { %v2530_v6 = vpack.c.bf16 %v581_v1, %v580_v63  ;;  %v552_v9 = vadd.f32 %v2496_v38, %v463_v2 }
  0xfe   :  { %v292_v5 = vpop.f32.mrf.mxu0  ;;  %v465_v8 = vpop.f32.mrf.mxu1 }
  0xff   :  { %v466_v10 = vadd.f32 %v465_v8, %v292_v5  ;;  %636 = vrot.lane.b32.xlu0 %v2530_v6, %s2252_s2  ;;  %v582_v16 = vmax.f32 %v552_v9, 0.0 }
 0x100   :  { %v2032_v11 = vpop.f32.mrf.mxu0  ;;  %v2096_v12 = vpop.f32.mrf.mxu1 }
 0x101   :  { %v553_v13 = vadd.f32 %v2496_v38, %v466_v10 }
 0x102   :  { %v297_v14 = vpop.f32.mrf.mxu0  ;;  %v470_v15 = vpop.f32.mrf.mxu1 }
 0x103   :  { %v583_v17 = vmax.f32 %v553_v13, 0.0  ;;  %v471_v18 = vadd.f32 %v470_v15, %v297_v14 }
 0x104   :  { %v2035_v19 = vpop.f32.mrf.mxu0  ;;  %v2099_v20 = vpop.f32.mrf.mxu1 }
 0x105   :  { %v2536_v23 = vpack.c.bf16 %v583_v17, %v582_v16  ;;  %v554_v25 = vadd.f32 %v2496_v38, %v471_v18 }
 0x106   :  { %v300_v21 = vpop.f32.mrf.mxu0  ;;  %v473_v24 = vpop.f32.mrf.mxu1 }
 0x107   :  { %v474_v26 = vadd.f32 %v473_v24, %v300_v21  ;;  %638 = vrot.lane.b32.xlu1 %v2536_v23, %s2252_s2  ;;  %v584_v32 = vmax.f32 %v554_v25, 0.0 }
 0x108   :  { %v2036_v27 = vpop.f32.mrf.mxu0  ;;  %v2100_v28 = vpop.f32.mrf.mxu1 }
 0x109   :  { %v555_v29 = vadd.f32 %v2496_v38, %v474_v26 }
 0x10a   :  { %v305_v30 = vpop.f32.mrf.mxu0  ;;  %v478_v31 = vpop.f32.mrf.mxu1 }
 0x10b   :  { %v585_v33 = vmax.f32 %v555_v29, 0.0  ;;  %v479_v34 = vadd.f32 %v478_v31, %v305_v30 }
 0x10c   :  { %v2039_v35 = vpop.f32.mrf.mxu0  ;;  %v2103_v36 = vpop.f32.mrf.mxu1 }
 0x10d   :  { %v2542_v40 = vpack.c.bf16 %v585_v33, %v584_v32  ;;  %v556_v42 = vadd.f32 %v2496_v38, %v479_v34 }
 0x10e   :  { %v308_v39 = vpop.f32.mrf.mxu0  ;;  %v481_v41 = vpop.f32.mrf.mxu1 }
 0x10f   :  { %v482_v43 = vadd.f32 %v481_v41, %v308_v39  ;;  %640 = vrot.lane.b32.xlu0 %v2542_v40, %s2252_s2  ;;  %v586_v49 = vmax.f32 %v556_v42, 0.0 }
 0x110   :  { %v2040_v44 = vpop.f32.mrf.mxu0  ;;  %v2104_v45 = vpop.f32.mrf.mxu1 }
 0x111   :  { %v557_v46 = vadd.f32 %v2496_v38, %v482_v43 }
 0x112   :  { %v313_v47 = vpop.f32.mrf.mxu0  ;;  %v486_v48 = vpop.f32.mrf.mxu1 }
 0x113   :  { %v587_v50 = vmax.f32 %v557_v46, 0.0  ;;  %v487_v51 = vadd.f32 %v486_v48, %v313_v47 }
 0x114   :  { %v2043_v52 = vpop.f32.mrf.mxu0  ;;  %v2107_v55 = vpop.f32.mrf.mxu1 }
 0x115   :  { %v2548_v57 = vpack.c.bf16 %v587_v50, %v586_v49  ;;  %v558_v59 = vadd.f32 %v2496_v38, %v487_v51 }
 0x116   :  { %v316_v56 = vpop.f32.mrf.mxu0  ;;  %v489_v58 = vpop.f32.mrf.mxu1 }
 0x117   :  { %v490_v60 = vadd.f32 %v489_v58, %v316_v56  ;;  %642 = vrot.lane.b32.xlu1 %v2548_v57, %s2252_s2  ;;  %v588_v3 = vmax.f32 %v558_v59, 0.0 }
 0x118   :  { %v2044_v61 = vpop.f32.mrf.mxu0  ;;  %v2108_v62 = vpop.f32.mrf.mxu1 }
 0x119   :  { %v559_v63 = vadd.f32 %v2496_v38, %v490_v60 }
 0x11a   :  { %v321_v1 = vpop.f32.mrf.mxu0  ;;  %v494_v2 = vpop.f32.mrf.mxu1 }
 0x11b   :  { %v589_v4 = vmax.f32 %v559_v63, 0.0  ;;  %v495_v5 = vadd.f32 %v494_v2, %v321_v1  ;;  %v2185_v63 = vld [vmem:[%s2853_s5 + $0x78] sm:$0xff]  }
 0x11c   :  { %v2047_v8 = vpop.f32.mrf.mxu0  ;;  %v2111_v9 = vpop.f32.mrf.mxu1  ;;  %1926 = vmatprep.subr.bf16.mxu1 %v2185_v63 }
 0x11d   :  { %v2554_v11 = vpack.c.bf16 %v589_v4, %v588_v3  ;;  %v560_v13 = vadd.f32 %v2496_v38, %v495_v5  ;;  %v2186_v4 = vld [vmem:[%s2853_s5 + $0x38] sm:$0xff]   ;;  %v2187_v8 = vld [vmem:[%s2853_s5 + $0x70] sm:$0xff]  }
 0x11e   :  { %v324_v10 = vpop.f32.mrf.mxu0  ;;  %v497_v12 = vpop.f32.mrf.mxu1  ;;  %1927 = vmatpush3.bf16.msra.mxu1 %v2186_v4  ;;  %v2199_v4 = vld [vmem:[%s2853_s5 + $0x40] sm:$0xff]  }
 0x11f   :  { %v498_v14 = vadd.f32 %v497_v12, %v324_v10  ;;  %644 = vrot.lane.b32.xlu0 %v2554_v11, %s2252_s2  ;;  %v590_v20 = vmax.f32 %v560_v13, 0.0  ;;  %v2188_v12 = vld [vmem:[%s2853_s5 + $0x30] sm:$0xff]   ;;  %1928 = vmatprep.subr.bf16.mxu1 %v2187_v8 }
 0x120   :  { %v2048_v15 = vpop.f32.mrf.mxu0  ;;  %v2112_v16 = vpop.f32.mrf.mxu1 }
 0x121   :  { %v561_v17 = vadd.f32 %v2496_v38, %v498_v14  ;;  %v2189_v14 = vld [vmem:[%s2853_s5 + $0x68] sm:$0xff]  }
 0x122   :  { %v329_v18 = vpop.f32.mrf.mxu0  ;;  %v502_v19 = vpop.f32.mrf.mxu1  ;;  %1929 = vmatpush3.bf16.msra.mxu1 %v2188_v12 }
 0x123   :  { %v591_v21 = vmax.f32 %v561_v17, 0.0  ;;  %v503_v24 = vadd.f32 %v502_v19, %v329_v18  ;;  %1930 = vmatprep.subr.bf16.mxu1 %v2189_v14 }
 0x124   :  { %v2051_v25 = vpop.f32.mrf.mxu0  ;;  %v2115_v26 = vpop.f32.mrf.mxu1 }
 0x125   :  { %v2560_v28 = vpack.c.bf16 %v591_v21, %v590_v20  ;;  %v562_v30 = vadd.f32 %v2496_v38, %v503_v24  ;;  %v2190_v24 = vld [vmem:[%s2853_s5 + $0x28] sm:$0xff]   ;;  %v2191_v26 = vld [vmem:[%s2853_s5 + $0x60] sm:$0xff]  }
 0x126   :  { %v332_v27 = vpop.f32.mrf.mxu0  ;;  %v505_v29 = vpop.f32.mrf.mxu1  ;;  %1931 = vmatpush3.bf16.msra.mxu1 %v2190_v24 }
 0x127   :  { %v506_v31 = vadd.f32 %v505_v29, %v332_v27  ;;  %646 = vrot.lane.b32.xlu1 %v2560_v28, %s2252_s2  ;;  %v592_v39 = vmax.f32 %v562_v30, 0.0  ;;  %1932 = vmatprep.subr.bf16.mxu1 %v2191_v26 }
 0x128   :  { %v2052_v32 = vpop.f32.mrf.mxu0  ;;  %v2116_v33 = vpop.f32.mrf.mxu1 }
 0x129   :  { %v563_v34 = vadd.f32 %v2496_v38, %v506_v31  ;;  %v2192_v33 = vld [vmem:[%s2853_s5 + $0x20] sm:$0xff]  }
 0x12a   :  { %v337_v35 = vpop.f32.mrf.mxu0  ;;  %v510_v36 = vpop.f32.mrf.mxu1  ;;  %1933 = vmatpush3.bf16.msra.mxu1 %v2192_v33 }
 0x12b   :  { %v593_v41 = vmax.f32 %v563_v34, 0.0  ;;  %v511_v42 = vadd.f32 %v510_v36, %v337_v35  ;;  %v2193_v36 = vld [vmem:[%s2853_s5 + $0x58] sm:$0xff]  }
 0x12c   :  { %v2055_v43 = vpop.f32.mrf.mxu0  ;;  %v2119_v44 = vpop.f32.mrf.mxu1  ;;  %1934 = vmatprep.subr.bf16.mxu1 %v2193_v36 }
 0x12d   :  { %v2566_v46 = vpack.c.bf16 %v593_v41, %v592_v39  ;;  %v564_v48 = vadd.f32 %v2496_v38, %v511_v42  ;;  %v2194_v42 = vld [vmem:[%s2853_s5 + $0x18] sm:$0xff]   ;;  %v2195_v44 = vld [vmem:[%s2853_s5 + $0x50] sm:$0xff]  }
 0x12e   :  { %v340_v45 = vpop.f32.mrf.mxu0  ;;  %v513_v47 = vpop.f32.mrf.mxu1  ;;  %1935 = vmatpush3.bf16.msra.mxu1 %v2194_v42 }
 0x12f   :  { %v514_v49 = vadd.f32 %v513_v47, %v340_v45  ;;  %648 = vrot.lane.b32.xlu0 %v2566_v46, %s2252_s2  ;;  %v594_v58 = vmax.f32 %v564_v48, 0.0  ;;  %v2196_v47 = vld [vmem:[%s2853_s5 + $0x10] sm:$0xff]   ;;  %1936 = vmatprep.subr.bf16.mxu1 %v2195_v44 }
 0x130   :  { %v2056_v50 = vpop.f32.mrf.mxu0  ;;  %v2120_v51 = vpop.f32.mrf.mxu1 }
 0x131   :  { %v565_v52 = vadd.f32 %v2496_v38, %v514_v49 }
 0x132   :  { %v345_v55 = vpop.f32.mrf.mxu0  ;;  %v518_v56 = vpop.f32.mrf.mxu1  ;;  %1937 = vmatpush3.bf16.msra.mxu1 %v2196_v47 }
 0x133   :  { %v595_v59 = vmax.f32 %v565_v52, 0.0  ;;  %v519_v60 = vadd.f32 %v518_v56, %v345_v55 }
 0x134   :  { %v2059_v61 = vpop.f32.mrf.mxu0  ;;  %v2123_v62 = vpop.f32.mrf.mxu1 }
 0x135   :  { %v566_v1 = vadd.f32 %v2496_v38, %v519_v60  ;;  %v2576_v3 = vpack.c.bf16 %v595_v59, %v594_v58 }
 0x136   :  { %v348_v2 = vpop.f32.mrf.mxu0  ;;  %v521_v5 = vpop.f32.mrf.mxu1 }
 0x137   :  { %v522_v9 = vadd.f32 %v521_v5, %v348_v2  ;;  %650 = vrot.lane.b32.xlu1 %v2576_v3, %s2252_s2  ;;  %v596_v15 = vmax.f32 %v566_v1, 0.0 }
 0x138   :  { %v2060_v10 = vpop.f32.mrf.mxu0  ;;  %v2124_v13 = vpop.f32.mrf.mxu1 }
 0x139   :  { %v567_v16 = vadd.f32 %v2496_v38, %v522_v9 }
 0x13a   :  { %v353_v17 = vpop.f32.mrf.mxu0  ;;  %v526_v18 = vpop.f32.mrf.mxu1 }
 0x13b   :  { %v597_v19 = vmax.f32 %v567_v16, 0.0  ;;  %v527_v20 = vadd.f32 %v526_v18, %v353_v17 }
 0x13c   :  { %v2063_v21 = vpop.f32.mrf.mxu0  ;;  %v2127_v25 = vpop.f32.mrf.mxu1 }
 0x13d   :  { %v2599_v27 = vpack.c.bf16 %v597_v19, %v596_v15  ;;  %v568_v29 = vadd.f32 %v2496_v38, %v527_v20 }
 0x13e   :  { %v356_v30 = vpop.f32.mrf.mxu0  ;;  %v529_v31 = vpop.f32.mrf.mxu1 }
 0x13f   :  { %652 = vrot.lane.b32.xlu0 %v2599_v27, %s2252_s2  ;;  %v530_v32 = vadd.f32 %v529_v31, %v356_v30  ;;  %v598_v35 = vmax.f32 %v568_v29, 0.0 }
 0x140   :  { %v2064_v34 = vpop.f32.mrf.mxu0  ;;  %v2128_v39 = vpop.f32.mrf.mxu1 }
 0x141   :  { %v569_v41 = vadd.f32 %v2496_v38, %v530_v32 }
 0x143   :  { %v599_v43 = vmax.f32 %v569_v41, 0.0 }
 0x145   :  { %v614_v45 = vpack.c.bf16 %v599_v43, %v598_v35 }
 0x151   :  { %v629_v38 = vpop.permute.xlu0 %628 }
 0x152   :  { %v657_v48 = vsel %vm654_vm2, %v2500_v54, %v629_v38 }
 0x153   :  { %871 = vmatmul.mubr.bf16.vlgmr.msra.gmra.mxu0 %v657_v48 }
 0x154   :  { %1747 = vmatprep.mubr.msk.bf16.mxu0 %vm654_vm2, %v2518_v37 }
 0x159   :  { %v631_v49 = vpop.permute.xlu0 %630 }
 0x15a   :  { %v661_v50 = vsel %vm654_vm2, %v2504_v7, %v631_v49 }
 0x15b   :  { %879 = vmatmul.mubr.bf16.gmra.mxu0 %v661_v50 }
 0x15c   :  { %1748 = vmatprep.mubr.msk.bf16.mxu0 %vm654_vm2, %v2524_v53 }
 0x161   :  { %v633_v51 = vpop.permute.xlu1 %632 }
 0x162   :  { %v665_v52 = vsel %vm654_vm2, %v2510_v22, %v633_v51 }
 0x163   :  { %887 = vmatmul.mubr.bf16.gmra.mxu0 %v665_v52 }
 0x164   :  { %1749 = vmatprep.mubr.msk.bf16.mxu0 %vm654_vm2, %v2530_v6 }
 0x169   :  { %v635_v54 = vpop.permute.xlu1 %634 }
 0x16a   :  { %v669_v55 = vsel %vm654_vm2, %v2518_v37, %v635_v54 }
 0x16b   :  { %895 = vmatmul.mubr.bf16.gmra.mxu0 %v669_v55 }
 0x16c   :  { %1750 = vmatprep.mubr.msk.bf16.mxu0 %vm654_vm2, %v2536_v23 }
 0x171   :  { %v637_v7 = vpop.permute.xlu0 %636 }
 0x172   :  { %v673_v56 = vsel %vm654_vm2, %v2524_v53, %v637_v7  ;;  %v2202_v7 = vld [vmem:[%s2853_s5 + $0xb8] sm:$0xff]  }
 0x173   :  { %903 = vmatmul.mubr.bf16.gmra.mxu0 %v673_v56 }
 0x174   :  { %1751 = vmatprep.mubr.msk.bf16.mxu0 %vm654_vm2, %v2542_v40 }
 0x179   :  { %v639_v22 = vpop.permute.xlu1 %638 }
 0x17a   :  { %v677_v58 = vsel %vm654_vm2, %v2530_v6, %v639_v22 }
 0x17b   :  { %911 = vmatmul.mubr.bf16.gmra.mxu0 %v677_v58  ;;  %v2203_v58 = vld [vmem:[%s2853_s5 + $0xf0] sm:$0xff]  }
 0x17c   :  { %1752 = vmatprep.mubr.msk.bf16.mxu0 %vm654_vm2, %v2548_v57 }
 0x181   :  { %v641_v37 = vpop.permute.xlu0 %640 }
 0x182   :  { %v681_v59 = vsel %vm654_vm2, %v2536_v23, %v641_v37 }
 0x183   :  { %919 = vmatmul.mubr.bf16.gmra.mxu0 %v681_v59  ;;  %v2204_v59 = vld [vmem:[%s2853_s5 + $0xb0] sm:$0xff]  }
 0x184   :  { %1753 = vmatprep.mubr.msk.bf16.mxu0 %vm654_vm2, %v2554_v11 }
 0x189   :  { %v643_v53 = vpop.permute.xlu1 %642 }
 0x18a   :  { %v685_v60 = vsel %vm654_vm2, %v2542_v40, %v643_v53  ;;  %v2197_v40 = vld [vmem:[%s2853_s5 + $0x48] sm:$0xff]  }
 0x18b   :  { %927 = vmatmul.mubr.bf16.gmra.mxu0 %v685_v60  ;;  %1938 = vmatprep.subr.bf16.mxu1 %v2197_v40  ;;  %v2205_v60 = vld [vmem:[%s2853_s5 + $0xe8] sm:$0xff]  }
 0x18c   :  { %1754 = vmatprep.mubr.msk.bf16.mxu0 %vm654_vm2, %v2560_v28 }
 0x191   :  { %v645_v6 = vpop.permute.xlu0 %644 }
 0x192   :  { %v689_v61 = vsel %vm654_vm2, %v2548_v57, %v645_v6  ;;  %v2198_v57 = vld [vmem:[%s2853_s5 + $0x8] sm:$0xff]  }
 0x193   :  { %935 = vmatmul.mubr.bf16.gmra.mxu0 %v689_v61  ;;  %1939 = vmatpush3.bf16.msra.mxu1 %v2198_v57  ;;  %v2206_v61 = vld [vmem:[%s2853_s5 + $0xa8] sm:$0xff]   ;;  %v2208_v57 = vld [vmem:[%s2853_s5 + $0xa0] sm:$0xff]  }
 0x194   :  { %1755 = vmatprep.mubr.msk.bf16.mxu0 %vm654_vm2, %v2566_v46  ;;  %1940 = vmatprep.subr.bf16.mxu1 %v2199_v4 }
 0x199   :  { %v647_v23 = vpop.permute.xlu1 %646 }
 0x19a   :  { %v693_v62 = vsel %vm654_vm2, %v2554_v11, %v647_v23 }
 0x19b   :  { %943 = vmatmul.mubr.bf16.gmra.mxu0 %v693_v62  ;;  %v2207_v62 = vld [vmem:[%s2853_s5 + $0xe0] sm:$0xff]  }
 0x19c   :  { %1756 = vmatprep.mubr.msk.bf16.mxu0 %vm654_vm2, %v2576_v3 }
 0x1a1   :  { %v649_v63 = vpop.permute.xlu0 %648 }
 0x1a2   :  { %v697_v1 = vsel %vm654_vm2, %v2560_v28, %v649_v63  ;;  %v2200_v28 = vld [vmem:[%s2853_s5] sm:$0xff]  }
 0x1a3   :  { %951 = vmatmul.mubr.bf16.gmra.mxu0 %v697_v1  ;;  %1941 = vmatpush3.bf16.msra.mxu1 %v2200_v28  ;;  %v2209_v1 = vld [vmem:[%s2853_s5 + $0xd8] sm:$0xff]   ;;  %v2211_v28 = vld [vmem:[%s2853_s5 + $0xd0] sm:$0xff]  }
 0x1a4   :  { %1757 = vmatprep.mubr.msk.bf16.mxu0 %vm654_vm2, %v2599_v27 }
 0x1a9   :  { %v651_v11 = vpop.permute.xlu1 %650 }
 0x1aa   :  { %v701_v2 = vsel %vm654_vm2, %v2566_v46, %v651_v11  ;;  %v2201_v46 = vld [vmem:[%s2853_s5 + $0xf8] sm:$0xff]  }
 0x1ab   :  { %959 = vmatmul.mubr.bf16.gmra.mxu0 %v701_v2  ;;  %1948 = vmatprep.subr.bf16.mxu1 %v2201_v46  ;;  %v2210_v2 = vld [vmem:[%s2853_s5 + $0x98] sm:$0xff]  }
 0x1ac   :  { %1758 = vmatprep.mubr.msk.bf16.mxu0 %vm654_vm2, %v614_v45 }
 0x1b1   :  { %v653_v5 = vpop.permute.xlu0 %652 }
 0x1b2   :  { %v705_v8 = vsel %vm654_vm2, %v2576_v3, %v653_v5  ;;  %v2687_v3 = vld [vmem:[%s2854_s4] ss:$0 sm:$0xff] }
 0x1b3   :  { %967 = vmatmul.mubr.bf16.gmra.mxu0 %v705_v8  ;;  %v2212_v8 = vld [vmem:[%s2853_s5 + $0x90] sm:$0xff]  }
 0x213   :  { %v872_v9 = vpop.f32.mrf.mxu0 }
 0x214   :  { %v873_v33 = vadd.f32 %v2687_v3, %v872_v9 }
 0x215   :  { %v874_v10 = vpop.f32.mrf.mxu0 }
 0x216   :  { %v973_v38 = vmax.f32 %v873_v33, 0.0  ;;  %v2213_v10 = vld [vmem:[%s2853_s5 + $0xc8] sm:$0xff]  }
 0x217   :  { %v875_v12 = vpop.f32.mrf.mxu0 }
 0x218   :  { %v876_v27 = vadd.f32 %v2687_v3, %v875_v12 }
 0x219   :  { %v877_v13 = vpop.f32.mrf.mxu0 }
 0x21a   :  { %v974_v41 = vmax.f32 %v876_v27, 0.0 }
 0x21b   :  { %v880_v14 = vpop.f32.mrf.mxu0 }
 0x21c   :  { %v881_v29 = vadd.f32 %v2687_v3, %v880_v14 }
 0x21d   :  { %v882_v15 = vpop.f32.mrf.mxu0 }
 0x21e   :  { %v975_v42 = vmax.f32 %v881_v29, 0.0 }
 0x21f   :  { %v883_v16 = vpop.f32.mrf.mxu0 }
 0x220   :  { %v884_v24 = vadd.f32 %v2687_v3, %v883_v16  ;;  %v998_v52 = vmax.f32 %v973_v38, %v975_v42  ;;  %v2218_v38 = vld [vmem:[%s2853_s5 + $0x138] sm:$0xff]  }
 0x221   :  { %v885_v17 = vpop.f32.mrf.mxu0 }
 0x222   :  { %v976_v34 = vmax.f32 %v884_v24, 0.0  ;;  %v2215_v24 = vld [vmem:[%s2853_s5 + $0xc0] sm:$0xff]  }
 0x223   :  { %v888_v18 = vpop.f32.mrf.mxu0 }
 0x224   :  { %v889_v31 = vadd.f32 %v2687_v3, %v888_v18  ;;  %v999_v48 = vmax.f32 %v974_v41, %v976_v34  ;;  %v2214_v18 = vld [vmem:[%s2853_s5 + $0x88] sm:$0xff]   ;;  %v2216_v34 = vld [vmem:[%s2853_s5 + $0x80] sm:$0xff]   ;;  %v2217_v41 = vld [vmem:[%s2853_s5 + $0x178] sm:$0xff]  }
 0x225   :  { %v890_v19 = vpop.f32.mrf.mxu0 }
 0x226   :  { %v977_v44 = vmax.f32 %v889_v31, 0.0  ;;  %v1002_v56 = vpack.c.bf16 %v999_v48, %v998_v52  ;;  %v2220_v52 = vld [vmem:[%s2853_s5 + $0x130] sm:$0xff]  }
 0x227   :  { %v891_v20 = vpop.f32.mrf.mxu0 }
 0x228   :  { %v892_v32 = vadd.f32 %v2687_v3, %v891_v20 }
 0x229   :  { %v893_v21 = vpop.f32.mrf.mxu0 }
 0x22a   :  { %v978_v45 = vmax.f32 %v892_v32, 0.0 }
 0x22b   :  { %v896_v25 = vpop.f32.mrf.mxu0 }
 0x22c   :  { %v897_v26 = vadd.f32 %v2687_v3, %v896_v25 }
 0x22d   :  { %v898_v30 = vpop.f32.mrf.mxu0 }
 0x22e   :  { %v979_v36 = vmax.f32 %v897_v26, 0.0 }
 0x22f   :  { %v899_v35 = vpop.f32.mrf.mxu0 }
 0x230   :  { %v900_v39 = vadd.f32 %v2687_v3, %v899_v35  ;;  %v1000_v50 = vmax.f32 %v977_v44, %v979_v36 }
 0x231   :  { %v901_v43 = vpop.f32.mrf.mxu0 }
 0x232   :  { %v980_v47 = vmax.f32 %v900_v39, 0.0 }
 0x233   :  { %v904_v49 = vpop.f32.mrf.mxu0 }
 0x234   :  { %v1001_v51 = vmax.f32 %v978_v45, %v980_v47  ;;  %v905_v19 = vadd.f32 %v2687_v3, %v904_v49 }
 0x235   :  { %v906_v54 = vpop.f32.mrf.mxu0 }
 0x236   :  { %v1003_v55 = vpack.c.bf16 %v1001_v51, %v1000_v50  ;;  %v981_v35 = vmax.f32 %v905_v19, 0.0  ;;  %v2219_v50 = vld [vmem:[%s2853_s5 + $0x170] sm:$0xff]  }
 0x237   :  { %v907_v22 = vpop.f32.mrf.mxu0 }
 0x238   :  { %1164 = vmatprep.mubr.bf16.mxu1 %v1003_v55  ;;  %v908_v13 = vadd.f32 %v2687_v3, %v907_v22  ;;  %v2221_v55 = vld [vmem:[%s2853_s5 + $0x168] sm:$0xff]  }
 0x239   :  { %v909_v37 = vpop.f32.mrf.mxu0  ;;  %1165 = vmatmul.mubr.bf16.vlgmr.msra.gmra.mxu1 %v1002_v56  ;;  %v2222_v56 = vld [vmem:[%s2853_s5 + $0x128] sm:$0xff]  }
 0x23a   :  { %1949 = vmatpush3.bf16.msra.mxu1 %v2202_v7  ;;  %v982_v27 = vmax.f32 %v908_v13, 0.0 }
 0x23b   :  { %v912_v53 = vpop.f32.mrf.mxu0  ;;  %1950 = vmatprep.subr.bf16.mxu1 %v2203_v58  ;;  %v2223_v58 = vld [vmem:[%s2853_s5 + $0x160] sm:$0xff]  }
 0x23c   :  { %v913_v14 = vadd.f32 %v2687_v3, %v912_v53 }
 0x23d   :  { %v914_v6 = vpop.f32.mrf.mxu0 }
 0x23e   :  { %1951 = vmatpush3.bf16.msra.mxu1 %v2204_v59  ;;  %v983_v29 = vmax.f32 %v913_v14, 0.0  ;;  %v2224_v59 = vld [vmem:[%s2853_s5 + $0x120] sm:$0xff]  }
 0x23f   :  { %v915_v23 = vpop.f32.mrf.mxu0  ;;  %1952 = vmatprep.subr.bf16.mxu1 %v2205_v60  ;;  %v2225_v60 = vld [vmem:[%s2853_s5 + $0x158] sm:$0xff]   ;;  %v2231_v14 = vld [vmem:[%s2853_s5 + $0x140] sm:$0xff]  }
 0x240   :  { %v916_v46 = vadd.f32 %v2687_v3, %v915_v23  ;;  %v1181_v44 = vmax.f32 %v981_v35, %v983_v29 }
 0x241   :  { %v917_v40 = vpop.f32.mrf.mxu0 }
 0x242   :  { %1953 = vmatpush3.bf16.msra.mxu1 %v2206_v61  ;;  %v984_v20 = vmax.f32 %v916_v46, 0.0  ;;  %v2226_v61 = vld [vmem:[%s2853_s5 + $0x118] sm:$0xff]  }
 0x243   :  { %v920_v63 = vpop.f32.mrf.mxu0  ;;  %1954 = vmatprep.subr.bf16.mxu1 %v2207_v62  ;;  %v2227_v62 = vld [vmem:[%s2853_s5 + $0x150] sm:$0xff]  }
 0x244   :  { %v921_v16 = vadd.f32 %v2687_v3, %v920_v63  ;;  %v1182_v36 = vmax.f32 %v982_v27, %v984_v20 }
 0x245   :  { %v922_v11 = vpop.f32.mrf.mxu0 }
 0x246   :  { %1955 = vmatpush3.bf16.msra.mxu1 %v2208_v57  ;;  %v985_v31 = vmax.f32 %v921_v16, 0.0  ;;  %v1185_v48 = vpack.c.bf16 %v1182_v36, %v1181_v44  ;;  %v2228_v57 = vld [vmem:[%s2853_s5 + $0x110] sm:$0xff]   ;;  %v2229_v11 = vld [vmem:[%s2853_s5 + $0x148] sm:$0xff]   ;;  %v2237_v44 = vld [vmem:[%s2855_s7 + $0x18] sm:$0xff]  }
 0x247   :  { %v923_v4 = vpop.f32.mrf.mxu0  ;;  %1956 = vmatprep.subr.bf16.mxu1 %v2209_v1 }
 0x248   :  { %v924_v17 = vadd.f32 %v2687_v3, %v923_v4 }
 0x249   :  { %v925_v5 = vpop.f32.mrf.mxu0 }
 0x24a   :  { %1957 = vmatpush3.bf16.msra.mxu1 %v2210_v2  ;;  %v986_v32 = vmax.f32 %v924_v17, 0.0 }
 0x24b   :  { %v928_v9 = vpop.f32.mrf.mxu0  ;;  %1958 = vmatprep.subr.bf16.mxu1 %v2211_v28 }
 0x24c   :  { %v929_v12 = vadd.f32 %v2687_v3, %v928_v9  ;;  %v2230_v9 = vld [vmem:[%s2853_s5 + $0x108] sm:$0xff]  }
 0x24d   :  { %v930_v15 = vpop.f32.mrf.mxu0 }
 0x24e   :  { %1959 = vmatpush3.bf16.msra.mxu1 %v2212_v8  ;;  %v987_v25 = vmax.f32 %v929_v12, 0.0 }
 0x24f   :  { %v931_v21 = vpop.f32.mrf.mxu0  ;;  %1960 = vmatprep.subr.bf16.mxu1 %v2213_v10 }
 0x250   :  { %v932_v26 = vadd.f32 %v2687_v3, %v931_v21  ;;  %v1183_v42 = vmax.f32 %v985_v31, %v987_v25  ;;  %v2232_v25 = vld [vmem:[%s2853_s5 + $0x100] sm:$0xff]  }
 0x251   :  { %v933_v30 = vpop.f32.mrf.mxu0 }
 0x252   :  { %v988_v33 = vmax.f32 %v932_v26, 0.0  ;;  %1961 = vmatpush3.bf16.msra.mxu1 %v2214_v18 }
 0x253   :  { %v936_v39 = vpop.f32.mrf.mxu0  ;;  %1962 = vmatprep.subr.bf16.mxu1 %v2215_v24 }
 0x254   :  { %v1184_v43 = vmax.f32 %v986_v32, %v988_v33  ;;  %v937_v10 = vadd.f32 %v2687_v3, %v936_v39  ;;  %v2233_v39 = vld [vmem:[%s2855_s7 + $0x38] sm:$0xff]  }
 0x255   :  { %v938_v45 = vpop.f32.mrf.mxu0 }
 0x256   :  { %1963 = vmatpush3.bf16.msra.mxu1 %v2216_v34  ;;  %v1186_v47 = vpack.c.bf16 %v1184_v43, %v1183_v42  ;;  %v989_v26 = vmax.f32 %v937_v10, 0.0  ;;  %v2235_v42 = vld [vmem:[%s2855_s7 + $0x28] sm:$0xff]   ;;  %v2236_v43 = vld [vmem:[%s2855_s7 + $0x20] sm:$0xff]   ;;  %v2238_v45 = vld [vmem:[%s2855_s7 + $0x10] sm:$0xff]  }
 0x257   :  { %v939_v49 = vpop.f32.mrf.mxu0  ;;  %1970 = vmatprep.subr.bf16.mxu1 %v2217_v41  ;;  %v2234_v41 = vld [vmem:[%s2855_s7 + $0x30] sm:$0xff]  }
 0x258   :  { %1348 = vmatprep.mubr.bf16.mxu1 %v1186_v47  ;;  %v940_v4 = vadd.f32 %v2687_v3, %v939_v49  ;;  %v2239_v47 = vld [vmem:[%s2855_s7 + $0x8] sm:$0xff]  }
 0x259   :  { %v941_v51 = vpop.f32.mrf.mxu0  ;;  %1349 = vmatmul.mubr.bf16.vlgmr.msra.gmra.mxu1 %v1185_v48 }
 0x25a   :  { %1971 = vmatpush3.bf16.msra.mxu1 %v2218_v38  ;;  %v990_v17 = vmax.f32 %v940_v4, 0.0  ;;  %v2240_v38 = vld [vmem:[%s2855_s7] sm:$0xff]  }
 0x25b   :  { %v944_v54 = vpop.f32.mrf.mxu0  ;;  %1972 = vmatprep.subr.bf16.mxu1 %v2219_v50 }
 0x25c   :  { %v945_v28 = vadd.f32 %v2687_v3, %v944_v54 }
 0x25d   :  { %v946_v7 = vpop.f32.mrf.mxu0 }
 0x25e   :  { %1973 = vmatpush3.bf16.msra.mxu1 %v2220_v52  ;;  %v991_v18 = vmax.f32 %v945_v28, 0.0 }
 0x25f   :  { %v947_v22 = vpop.f32.mrf.mxu0  ;;  %1974 = vmatprep.subr.bf16.mxu1 %v2221_v55 }
 0x260   :  { %v948_v63 = vadd.f32 %v2687_v3, %v947_v22  ;;  %v1359_v32 = vmax.f32 %v989_v26, %v991_v18  ;;  %v1775_v22 = vld [vmem:[%s2856_s6] ss:$0 sm:$0xff] }
 0x261   :  { %v949_v37 = vpop.f32.mrf.mxu0 }
 0x262   :  { %1975 = vmatpush3.bf16.msra.mxu1 %v2222_v56  ;;  %v992_v12 = vmax.f32 %v948_v63, 0.0 }
 0x263   :  { %v952_v53 = vpop.f32.mrf.mxu0  ;;  %1976 = vmatprep.subr.bf16.mxu1 %v2223_v58 }
 0x264   :  { %v953_v8 = vadd.f32 %v2687_v3, %v952_v53  ;;  %v1360_v27 = vmax.f32 %v990_v17, %v992_v12 }
 0x265   :  { %v954_v6 = vpop.f32.mrf.mxu0 }
 0x266   :  { %1977 = vmatpush3.bf16.msra.mxu1 %v2224_v59  ;;  %v993_v20 = vmax.f32 %v953_v8, 0.0  ;;  %v1363_v34 = vpack.c.bf16 %v1360_v27, %v1359_v32 }
 0x267   :  { %v955_v23 = vpop.f32.mrf.mxu0  ;;  %1978 = vmatprep.subr.bf16.mxu1 %v2225_v60 }
 0x268   :  { %v956_v46 = vadd.f32 %v2687_v3, %v955_v23 }
 0x269   :  { %v957_v40 = vpop.f32.mrf.mxu0 }
 0x26a   :  { %1979 = vmatpush3.bf16.msra.mxu1 %v2226_v61  ;;  %v994_v21 = vmax.f32 %v956_v46, 0.0 }
 0x26b   :  { %v960_v1 = vpop.f32.mrf.mxu0  ;;  %1980 = vmatprep.subr.bf16.mxu1 %v2227_v62 }
 0x26c   :  { %v961_v2 = vadd.f32 %v2687_v3, %v960_v1 }
 0x26d   :  { %v962_v5 = vpop.f32.mrf.mxu0 }
 0x26e   :  { %1981 = vmatpush3.bf16.msra.mxu1 %v2228_v57  ;;  %v995_v15 = vmax.f32 %v961_v2, 0.0  ;;  %v1872_v5 = vld [vmem:[%s2857_s8] ss:$0 sm:$0xff] }
 0x26f   :  { %v963_v13 = vpop.f32.mrf.mxu0  ;;  %1982 = vmatprep.subr.bf16.mxu1 %v2229_v11 }
 0x270   :  { %v964_v16 = vadd.f32 %v2687_v3, %v963_v13  ;;  %v1361_v30 = vmax.f32 %v993_v20, %v995_v15 }
 0x271   :  { %v965_v19 = vpop.f32.mrf.mxu0 }
 0x272   :  { %v996_v24 = vmax.f32 %v964_v16, 0.0  ;;  %1983 = vmatpush3.bf16.msra.mxu1 %v2230_v9 }
 0x273   :  { %v968_v29 = vpop.f32.mrf.mxu0  ;;  %1984 = vmatprep.subr.bf16.mxu1 %v2231_v14 }
 0x274   :  { %v1362_v31 = vmax.f32 %v994_v21, %v996_v24 }
 0x275   :  { %v969_v33 = vpop.f32.mrf.mxu0 }
 0x276   :  { %1985 = vmatpush3.bf16.msra.mxu1 %v2232_v25  ;;  %v1364_v3 = vpack.c.bf16 %v1362_v31, %v1361_v30 }
 0x277   :  { %v970_v35 = vpop.f32.mrf.mxu0  ;;  %2129 = vmatprep.subr.bf16.mxu1 %v2249_v0 }
 0x278   :  { %1526 = vmatprep.mubr.bf16.mxu1 %v1364_v3 }
 0x279   :  { %v971_v36 = vpop.f32.mrf.mxu0  ;;  %1527 = vmatmul.mubr.bf16.vlgmr.msra.gmra.mxu1 %v1363_v34 }
 0x27a   :  { %2145 = vmatprep.mubr.msk.bf16.mxu1 %vm2250_vm0, %v2249_v0  ;;  %2130 = vmatpush3.bf16.msra.mxu1 %v2233_v39 }
 0x27b   :  { %2131 = vmatprep.subr.bf16.mxu1 %v2249_v0 }
 0x27e   :  { %2132 = vmatpush3.bf16.msra.mxu1 %v2234_v41 }
 0x27f   :  { %2133 = vmatprep.subr.bf16.mxu1 %v2249_v0 }
 0x282   :  { %2134 = vmatpush3.bf16.msra.mxu1 %v2235_v42 }
 0x283   :  { %2135 = vmatprep.subr.bf16.mxu1 %v2249_v0 }
 0x286   :  { %2136 = vmatpush3.bf16.msra.mxu1 %v2236_v43 }
 0x287   :  { %2137 = vmatprep.subr.bf16.mxu1 %v2249_v0 }
 0x28a   :  { %2138 = vmatpush3.bf16.msra.mxu1 %v2237_v44 }
 0x28b   :  { %2139 = vmatprep.subr.bf16.mxu1 %v2249_v0 }
 0x28e   :  { %2140 = vmatpush3.bf16.msra.mxu1 %v2238_v45 }
 0x28f   :  { %2141 = vmatprep.subr.bf16.mxu1 %v2249_v0 }
 0x292   :  { %2142 = vmatpush3.bf16.msra.mxu1 %v2239_v47 }
 0x293   :  { %2143 = vmatprep.subr.bf16.mxu1 %v2249_v0 }
 0x296   :  { %2144 = vmatpush3.bf16.msra.mxu1 %v2240_v38 }
 0x2f9   :  { %v1942_v48 = vpop.f32.mrf.mxu1 }
 0x2fb   :  { %v1943_v49 = vpop.f32.mrf.mxu1 }
 0x2fc   :  { %v1944_v56 = vadd.f32 %v1943_v49, %v1942_v48 }
 0x2fd   :  { %v1945_v50 = vpop.f32.mrf.mxu1 }
 0x2fe   :  { %v1179_v53 = vadd.f32 %v1944_v56, %v1775_v22 }
 0x2ff   :  { %v1946_v51 = vpop.f32.mrf.mxu1 }
 0x300   :  { %v1947_v0 = vadd.f32 %v1946_v51, %v1945_v50 }
 0x302   :  { %v1180_v23 = vadd.f32 %v1947_v0, %v1775_v22 }
 0x319   :  { %v1964_v52 = vpop.f32.mrf.mxu1 }
 0x31b   :  { %v1965_v54 = vpop.f32.mrf.mxu1 }
 0x31c   :  { %v1966_v37 = vadd.f32 %v1965_v54, %v1964_v52 }
 0x31d   :  { %v1967_v55 = vpop.f32.mrf.mxu1 }
 0x31e   :  { %v1357_v62 = vadd.f32 %v1966_v37, %v1179_v53 }
 0x31f   :  { %v1968_v7 = vpop.f32.mrf.mxu1 }
 0x320   :  { %v1969_v60 = vadd.f32 %v1968_v7, %v1967_v55 }
 0x322   :  { %v1358_v57 = vadd.f32 %v1969_v60, %v1180_v23 }
 0x339   :  { %v1986_v58 = vpop.f32.mrf.mxu1 }
 0x33b   :  { %v1987_v59 = vpop.f32.mrf.mxu1 }
 0x33c   :  { %v1988_v6 = vadd.f32 %v1987_v59, %v1986_v58 }
 0x33d   :  { %v1989_v61 = vpop.f32.mrf.mxu1 }
 0x33e   :  { %v1535_v63 = vadd.f32 %v1988_v6, %v1357_v62 }
 0x33f   :  { %v1990_v40 = vpop.f32.mrf.mxu1 }
 0x340   :  { %v1991_v1 = vadd.f32 %v1990_v40, %v1989_v61  ;;  %v1537_v2 = vmax.f32 %v1535_v63, 0.0 }
 0x342   :  { %v1536_v11 = vadd.f32 %v1991_v1, %v1358_v57 }
 0x344   :  { %v1538_v4 = vmax.f32 %v1536_v11, 0.0 }
 0x346   :  { %v1539_v28 = vpack.c.bf16 %v1538_v4, %v1537_v2 }
 0x348   :  { %2146 = vmatmul.mubr.bf16.vlgmr.msra.gmra.mxu1 %v1539_v28 }
 0x408   :  { %v1645_v8 = vpop.f32.mrf.mxu1 }
 0x409   :  { %v1646_v46 = vadd.f32 %v1872_v5, %v1645_v8 }
 0x40a   :  { %v2147_v9 = vpop.f32.mrf.mxu1 }
 0x40b   :  { %v1881_v10 = vmul.f32 -1.442695, %v1646_v46 }
 0x40c   :  { %v1648_v12 = vpop.f32.mrf.mxu1 }
 0x40d   :  { %2241 = vpow2.f32 %v1881_v10  ;;  %v1649_v13 = vadd.f32 %v1872_v5, %v1648_v12 }
 0x40e   :  { %v2148_v14 = vpop.f32.mrf.mxu1 }
 0x40f   :  { %v1882_v15 = vmul.f32 -1.442695, %v1649_v13 }
 0x411   :  { %2243 = vpow2.f32 %v1882_v15 }
 0x41a   :  { %v2242_v16 = vpop.eup %2241 }
 0x41b   :  { %v1658_v17 = vadd.f32 1.0, %v2242_v16 }
 0x41d   :  { %2245 = vrcp.f32 %v1658_v17 }
 0x41e   :  { %v2244_v18 = vpop.eup %2243 }
 0x41f   :  { %v1659_v19 = vadd.f32 1.0, %v2244_v18 }
 0x421   :  { %2247 = vrcp.f32 %v1659_v19 }
 0x42a   :  { %v2246_v20 = vpop.eup %2245 }
 0x42e   :  { %v2248_v21 = vpop.eup %2247 }
 0x42f   :  { %v1890_v24 = vpack.c.bf16 %v2248_v21, %v2246_v20 }
 0x431   :  { %1891 = vst [vmem:[%s2858_s9] sm:$0xff] %v1890_v24  }

</bundles_post_ra>
